<compile_context>
chip_gen: v7x
topology: tpu7x:2x2x1
jax: 0.10.0
libtpu: 0.0.40
codegen_flags: <defaults>
</compile_context>

<pallas_src>
import jax
import jax.numpy as jnp
from jax import lax
from jax.experimental import pallas as pl
from jax.experimental.pallas import tpu as pltpu

IN_SIZE = 4
HIDE_SIZE = 16
MLP_HIDDEN = 64
N_ACTIONS = 2
GROUP = 8            # timesteps packed per sublane group / per unrolled recurrence group
LANE = 128           # lanes per independent hidden sub-chain
BATCH_TILE = 256     # batch lanes per grid tile (= 2 interleaved 128-lane chains)


def actor_kernel(x_ref, w8_ref, b8_ref, sp_ref, lt_ref, wh_ref,
                 w1_ref, b1_ref, w2_ref, b2_ref, out_ref,
                 hid_ref, act_ref, xq_ref, cm_ref):
    """One (batch-tile, time-chunk) grid step of the masked tanh-RNN + MLP head.

    x_ref:   (1, 1, ng, 8*4, bb) states chunk: 8 timesteps on sublanes, batch on lanes
    weights: column convention (y = W @ x + b)
    out_ref: (2, bb) softmax probabilities (written on the last time chunk)
    hid_ref/act_ref: hidden state / break-latch carried across time chunks
    xq_ref/cm_ref:   hoisted input projections / cumulative break mask (per chunk)
    """
    ti = pl.program_id(1)
    ng = cm_ref.shape[0]                    # timestep groups in this chunk
    bb = hid_ref.shape[1]                   # batch lanes in this tile
    nchain = bb // LANE                     # independent recurrence sub-chains

    @pl.when(ti == 0)
    def _init():
        hid_ref[...] = jnp.zeros_like(hid_ref)
        act_ref[...] = jnp.ones_like(act_ref)

    # ---- hoist phase (everything off the serial latency chain) --------------
    w8 = w8_ref[...]                        # (8*16, 8*4) block-diagonal wx
    b8 = b8_ref[...]                        # (8*16, 1)   tiled bias
    sp = sp_ref[...]                        # (8, 8*4)    per-timestep sum-pool
    lt = lt_ref[...]                        # (8, 8)      lower-triangular ones

    def hoist_group(u, carry_mask):
        xu = x_ref[0, 0, u]                 # (32, bb): 8 timesteps stacked on sublanes
        # All 8 per-timestep input projections in ONE MXU issue + one bias add.
        xp = jnp.dot(w8, xu, preferred_element_type=jnp.float32) + b8   # (128, bb)
        for g in range(GROUP):              # static, vreg-aligned sub-slices
            xq_ref[u * GROUP + g] = xp[g * HIDE_SIZE:(g + 1) * HIDE_SIZE]
        # Cumulative break mask: per-timestep "all-zero state" indicator, then its
        # prefix count, both via tiny MXU matmuls (no serial per-step latch work).
        zsum = jnp.dot(sp, jnp.abs(xu), preferred_element_type=jnp.float32)  # (8, bb)
        is_zero = (zsum == 0.0).astype(jnp.float32)
        zcnt = jnp.dot(lt, is_zero, preferred_element_type=jnp.float32)      # (8, bb)
        cum = jnp.where(zcnt > 0.5, 0.0, carry_mask)                         # (8, bb)
        cm_ref[u] = cum
        return cum[GROUP - 1:GROUP, :]      # latch after this group

    act_ref[...] = lax.fori_loop(0, ng, hoist_group, act_ref[...])

    # ---- serial recurrence: carry is the hidden state only ------------------
    wh = wh_ref[...]                        # (16, 16)
    # TODO(synk): keep wh resident across steps via pltpu.matmul_push_rhs /
    # matmul_acc_lhs / matmul_pop, and software-pipeline hoist(u+1) under
    # recurrence(u) to hide the remaining hoist cost.

    def group_step(u, hs):
        cum_u = cm_ref[u]                   # (8, bb) precomputed break mask
        hs = list(hs)
        for g in range(GROUP):              # static unroll inside the group
            xp = xq_ref[u * GROUP + g]      # (16, bb) hoisted input projection
            cm = cum_u[g:g + 1, :]          # (1, bb)
            for c in range(nchain):         # independent 128-lane sub-chains
                lo = c * LANE
                h_c = hs[c]
                nh = jnp.tanh(
                    jnp.dot(wh, h_c, preferred_element_type=jnp.float32)
                    + xp[:, lo:lo + LANE])
                hs[c] = jnp.where(cm[:, lo:lo + LANE] > 0.0, nh, h_c)
        return tuple(hs)

    hs0 = tuple(hid_ref[:, c * LANE:(c + 1) * LANE] for c in range(nchain))
    hs = lax.fori_loop(0, ng, group_step, hs0)
    for c in range(nchain):
        hid_ref[:, c * LANE:(c + 1) * LANE] = hs[c]

    # ---- MLP head + softmax, only after the last time chunk -----------------
    @pl.when(ti == pl.num_programs(1) - 1)
    def _finalize():
        h = hid_ref[...]                                                  # (16, bb)
        a1 = jnp.tanh(
            jnp.dot(w1_ref[...], h, preferred_element_type=jnp.float32)
            + b1_ref[...])                                                # (64, bb)
        logits = (jnp.dot(w2_ref[...], a1, preferred_element_type=jnp.float32)
                  + b2_ref[...])                                          # (2, bb)
        m = jnp.max(logits, axis=0, keepdims=True)
        e = jnp.exp(logits - m)
        denom = jnp.sum(e, axis=0, keepdims=True)
        # NOTE: approx reciprocal has ~1e-4-level relative error vs exact softmax.
        out_ref[...] = e * pl.reciprocal(denom, approx=True)


def actor_forward(states, params, *, tt_max=256):
    """Forward pass matching Actor.forward. Accepts (B, T, 4) or (T, 4)."""
    if states.ndim == 2:                    # single sequence -> (1, 2) like torch
        states = states[None]
    states = states.astype(jnp.float32)
    B, T, D = states.shape
    assert D == IN_SIZE
    assert tt_max % GROUP == 0

    # Batch padded to a multiple of 256 lanes: lane-dense vregs, bounded scratch
    # (never scales with raw B), and >1 tile for large B so the 'parallel' axis
    # can shard across v7x's two TensorCores.
    bb = BATCH_TILE
    b_pad = pl.cdiv(B, bb) * bb
    nb = b_pad // bb

    # Time chunks along a sequential grid axis (bounded VMEM + DMA/compute
    # overlap). Zero-padded tail timesteps are masked out by the same
    # break-on-zero logic as real all-zero states.
    tt = min(tt_max, pl.cdiv(T, GROUP) * GROUP)
    t_pad = pl.cdiv(T, tt) * tt
    nt = t_pad // tt
    ng = tt // GROUP

    x = jnp.pad(states, ((0, b_pad - B), (0, t_pad - T), (0, 0)))
    # (B_pad, T_pad, D) -> (nb, nt, ng, GROUP*D, bb): 8 timesteps on sublanes
    # (no 4->8 sublane padding in the DMA), batch on lanes.
    x = x.reshape(nb, bb, nt, ng, GROUP, D)
    x = x.transpose(0, 2, 3, 4, 5, 1)               # (nb, nt, ng, GROUP, D, bb)
    seq = x.reshape(nb, nt, ng, GROUP * D, bb)
    # TODO(synk): for HBM-bound (huge B*T) workloads, cast `seq` to bfloat16 here
    # (MXU accumulates in f32 and the !=0 break test survives the cast).

    wx = params["wx"].astype(jnp.float32)                        # (16, 4)
    wh = params["wh"].astype(jnp.float32)                        # (16, 16)
    b = params["b"].reshape(HIDE_SIZE, 1).astype(jnp.float32)    # (16, 1)
    eye_g = jnp.eye(GROUP, dtype=jnp.float32)
    w8 = jnp.kron(eye_g, wx)                                     # (128, 32)
    b8 = jnp.tile(b, (GROUP, 1))                                 # (128, 1)
    spool = jnp.kron(eye_g, jnp.ones((1, IN_SIZE), jnp.float32)) # (8, 32)
    ltri = jnp.tril(jnp.ones((GROUP, GROUP), jnp.float32))       # (8, 8)
    w1 = params["w1"].astype(jnp.float32)                        # (64, 16)
    b1 = params["b1"].reshape(MLP_HIDDEN, 1).astype(jnp.float32)
    w2 = params["w2"].astype(jnp.float32)                        # (2, 64)
    b2 = params["b2"].reshape(N_ACTIONS, 1).astype(jnp.float32)

    def _full(a):
        nd = a.ndim
        return pl.BlockSpec(a.shape, lambda bi, ti, nd=nd: (0,) * nd)

    in_specs = [
        pl.BlockSpec((1, 1, ng, GROUP * IN_SIZE, bb),
                     lambda bi, ti: (bi, ti, 0, 0, 0)),
        _full(w8), _full(b8), _full(spool), _full(ltri),
        _full(wh), _full(w1), _full(b1), _full(w2), _full(b2),
    ]
    out_specs = pl.BlockSpec((N_ACTIONS, bb), lambda bi, ti: (0, bi))

    # TODO(synk): on v7x, consider pltpu.CORE_PARALLEL on the batch axis when
    # nb >= 2 to guarantee both TensorCores receive work.
    out = pl.pallas_call(
        actor_kernel,
        out_shape=jax.ShapeDtypeStruct((N_ACTIONS, b_pad), jnp.float32),
        grid_spec=pltpu.PrefetchScalarGridSpec(
            num_scalar_prefetch=0,
            grid=(nb, nt),              # (parallel batch tiles, sequential time)
            in_specs=in_specs,
            out_specs=out_specs,
            scratch_shapes=[
                pltpu.VMEM((HIDE_SIZE, bb), jnp.float32),      # hidden carry
                pltpu.VMEM((1, bb), jnp.float32),              # break-latch carry
                pltpu.VMEM((tt, HIDE_SIZE, bb), jnp.float32),  # hoisted x-proj
                pltpu.VMEM((ng, GROUP, bb), jnp.float32),      # hoisted cum. mask
            ]),
        compiler_params=pltpu.CompilerParams(
            dimension_semantics=("parallel", "arbitrary"),
            vmem_limit_bytes=32 * 1024 * 1024),
    )(seq, w8, b8, spool, ltri, wh, w1, b1, w2, b2)

    return out[:, :B].T                     # (B, 2) softmax probabilities


def init_params(key):
    """Deterministic parameter init mirroring Actor.__init__ shapes."""
    k1, k2, k3, k4, k5, k6 = jax.random.split(key, 6)
    wx = jax.random.normal(k1, (HIDE_SIZE, IN_SIZE), jnp.float32)     # randn
    wh = jax.random.normal(k2, (HIDE_SIZE, HIDE_SIZE), jnp.float32)   # randn
    b = jnp.zeros((HIDE_SIZE, 1), jnp.float32)                        # zeros
    lim1 = 1.0 / jnp.sqrt(jnp.float32(HIDE_SIZE))                     # Linear default
    w1 = jax.random.uniform(k3, (MLP_HIDDEN, HIDE_SIZE), jnp.float32, -lim1, lim1)
    b1 = jax.random.uniform(k4, (MLP_HIDDEN,), jnp.float32, -lim1, lim1)
    lim2 = 1.0 / jnp.sqrt(jnp.float32(MLP_HIDDEN))
    w2 = jax.random.uniform(k5, (N_ACTIONS, MLP_HIDDEN), jnp.float32, -lim2, lim2)
    b2 = jax.random.uniform(k6, (N_ACTIONS,), jnp.float32, -lim2, lim2)
    return dict(wx=wx, wh=wh, b=b, w1=w1, b1=b1, w2=w2, b2=b2)


def actor_reference(states, params):
    """Pure-JAX reference with identical masked-break semantics."""
    if states.ndim == 2:
        seq = states[:, None, :]
    else:
        seq = jnp.transpose(states, (1, 0, 2))
    seq = seq.astype(jnp.float32)
    T, B, _ = seq.shape
    wx_t, wh_t = params["wx"].T, params["wh"].T
    b = params["b"].reshape(1, HIDE_SIZE)

    def step(carry, x_t):
        hidden, active = carry
        nonzero = jnp.any(x_t != 0.0, axis=-1, keepdims=True).astype(jnp.float32)
        active = active * nonzero
        new_h = jnp.tanh(x_t @ wx_t + hidden @ wh_t + b)
        hidden = jnp.where(active > 0.0, new_h, hidden)
        return (hidden, active), None

    (hidden, _), _ = lax.scan(
        step, (jnp.zeros((B, HIDE_SIZE), jnp.float32),
               jnp.ones((B, 1), jnp.float32)), seq)
    a1 = jnp.tanh(hidden @ params["w1"].T + params["b1"][None, :])
    logits = a1 @ params["w2"].T + params["b2"][None, :]
    return jax.nn.softmax(logits, axis=-1)


if __name__ == "__main__":
    key = jax.random.PRNGKey(0)
    pkey, skey, skey2 = jax.random.split(key, 3)
    params = init_params(pkey)

    # Case 1: small batch, break-on-zero tail.
    B, T = 2, 8
    states = jax.random.normal(skey, (B, T, IN_SIZE), jnp.float32)
    states = states.at[1, 5:].set(0.0)
    # TODO(synk): torch returns uninitialized torch.empty when a sequence's very
    # first state is all-zero; we define that case as the zero hidden state.
    out = jax.block_until_ready(actor_forward(states, params))
    ref = actor_reference(states, params)
    assert out.shape == (B, N_ACTIONS)
    assert jnp.allclose(out, ref, rtol=1e-3, atol=1e-3), (out, ref)

    # Case 2: odd batch / odd length exercises batch+time padding, plus a
    # mid-sequence all-zero state followed by nonzero data (break semantics).
    B2, T2 = 3, 11
    states2 = jax.random.normal(skey2, (B2, T2, IN_SIZE), jnp.float32)
    states2 = states2.at[0, 4].set(0.0)      # seq 0 breaks at t=4
    states2 = states2.at[2, 0].set(0.0)      # seq 2 breaks immediately (zero hidden)
    out2 = jax.block_until_ready(actor_forward(states2, params))
    ref2 = actor_reference(states2, params)
    assert out2.shape == (B2, N_ACTIONS)
    assert jnp.allclose(out2, ref2, rtol=1e-3, atol=1e-3), (out2, ref2)

    # Case 3: 2-D single-sequence path, mirrors torch's (1, 2) output.
    out_single = jax.block_until_ready(actor_forward(states[0], params))
    ref_single = actor_reference(states[0], params)
    assert out_single.shape == (1, N_ACTIONS)
    assert jnp.allclose(out_single, ref_single, rtol=1e-3, atol=1e-3)

    print("KERNEL_OK")
</pallas_src>

<mosaic_0001>
module attributes {stable_mosaic.version = 11 : i64} {
  func.func @actor_kernel(%arg0: i32, %arg1: i32, %arg2: memref<1x1x1x32x256xf32, #tpu.memory_space<vmem>>, %arg3: memref<128x32xf32, #tpu.memory_space<vmem>>, %arg4: memref<128x1xf32, #tpu.memory_space<vmem>>, %arg5: memref<8x32xf32, #tpu.memory_space<vmem>>, %arg6: memref<8x8xf32, #tpu.memory_space<vmem>>, %arg7: memref<16x16xf32, #tpu.memory_space<vmem>>, %arg8: memref<64x16xf32, #tpu.memory_space<vmem>>, %arg9: memref<64x1xf32, #tpu.memory_space<vmem>>, %arg10: memref<2x64xf32, #tpu.memory_space<vmem>>, %arg11: memref<2x1xf32, #tpu.memory_space<vmem>>, %arg12: memref<2x256xf32, #tpu.memory_space<vmem>>, %arg13: memref<16x256xf32, #tpu.memory_space<vmem>>, %arg14: memref<1x256xf32, #tpu.memory_space<vmem>>, %arg15: memref<8x16x256xf32, #tpu.memory_space<vmem>>, %arg16: memref<1x8x256xf32, #tpu.memory_space<vmem>>) attributes {dimension_semantics = [#tpu.dimension_semantics<parallel>, #tpu.dimension_semantics<arbitrary>], iteration_bounds = array<i64: 1, 1>, scalar_prefetch = 0 : i64, scratch_operands = 4 : i64, tpu.core_type = #tpu.core_type<tc>, window_params = [{transform_indices = @transform_0, window_bounds = array<i64: 1, 1, 1, 32, 256>}, {pipeline_mode = #tpu.pipeline_mode<synchronous>, transform_indices = @transform_1, window_bounds = array<i64: 128, 32>}, {pipeline_mode = #tpu.pipeline_mode<synchronous>, transform_indices = @transform_2, window_bounds = array<i64: 128, 1>}, {pipeline_mode = #tpu.pipeline_mode<synchronous>, transform_indices = @transform_3, window_bounds = array<i64: 8, 32>}, {pipeline_mode = #tpu.pipeline_mode<synchronous>, transform_indices = @transform_4, window_bounds = array<i64: 8, 8>}, {pipeline_mode = #tpu.pipeline_mode<synchronous>, transform_indices = @transform_5, window_bounds = array<i64: 16, 16>}, {pipeline_mode = #tpu.pipeline_mode<synchronous>, transform_indices = @transform_6, window_bounds = array<i64: 64, 16>}, {pipeline_mode = #tpu.pipeline_mode<synchronous>, transform_indices = @transform_7, window_bounds = array<i64: 64, 1>}, {pipeline_mode = #tpu.pipeline_mode<synchronous>, transform_indices = @transform_8, window_bounds = array<i64: 2, 64>}, {pipeline_mode = #tpu.pipeline_mode<synchronous>, transform_indices = @transform_9, window_bounds = array<i64: 2, 1>}, {transform_indices = @transform_10, window_bounds = array<i64: 2, 256>}]} {
    %c0_i32 = arith.constant 0 : i32
    %0 = arith.cmpi eq, %arg1, %c0_i32 : i32
    %1 = arith.extui %0 : i1 to i32
    %c0_i32_0 = arith.constant 0 : i32
    %2 = arith.cmpi ne, %1, %c0_i32_0 : i32
    scf.if %2 {
      %cst_128 = arith.constant 0.000000e+00 : f32
      %308 = vector.broadcast %cst_128 : f32 to vector<16x256xf32>
      %c0_129 = arith.constant 0 : index
      %c0_130 = arith.constant 0 : index
      %309 = vector.load %arg13[%c0_129, %c0_130] : memref<16x256xf32, #tpu.memory_space<vmem>>, vector<16x256xf32>
      tpu.vector_store %arg13[%c0_129, %c0_130], %308 {strides = array<i32>} : memref<16x256xf32, #tpu.memory_space<vmem>>, vector<16x256xf32>,
      %cst_131 = arith.constant 1.000000e+00 : f32
      %310 = vector.broadcast %cst_131 : f32 to vector<1x256xf32>
      %c0_132 = arith.constant 0 : index
      %c0_133 = arith.constant 0 : index
      %311 = vector.load %arg14[%c0_132, %c0_133] : memref<1x256xf32, #tpu.memory_space<vmem>>, vector<1x256xf32>
      tpu.vector_store %arg14[%c0_132, %c0_133], %310 {strides = array<i32>} : memref<1x256xf32, #tpu.memory_space<vmem>>, vector<1x256xf32>,
    } else {
    }
    %c0 = arith.constant 0 : index
    %c0_1 = arith.constant 0 : index
    %3 = vector.load %arg3[%c0, %c0_1] : memref<128x32xf32, #tpu.memory_space<vmem>>, vector<128x32xf32>
    %c0_2 = arith.constant 0 : index
    %c0_3 = arith.constant 0 : index
    %4 = vector.load %arg4[%c0_2, %c0_3] : memref<128x1xf32, #tpu.memory_space<vmem>>, vector<128x1xf32>
    %c0_4 = arith.constant 0 : index
    %c0_5 = arith.constant 0 : index
    %5 = vector.load %arg5[%c0_4, %c0_5] : memref<8x32xf32, #tpu.memory_space<vmem>>, vector<8x32xf32>
    %c0_6 = arith.constant 0 : index
    %c0_7 = arith.constant 0 : index
    %6 = vector.load %arg6[%c0_6, %c0_7] : memref<8x8xf32, #tpu.memory_space<vmem>>, vector<8x8xf32>
    %c0_8 = arith.constant 0 : index
    %c0_9 = arith.constant 0 : index
    %7 = vector.load %arg14[%c0_8, %c0_9] : memref<1x256xf32, #tpu.memory_space<vmem>>, vector<1x256xf32>
    %c0_i32_10 = arith.constant 0 : i32
    %c0_11 = arith.constant 0 : index
    %c0_12 = arith.constant 0 : index
    %8 = arith.index_cast %c0_i32_10 : i32 to index
    %c0_13 = arith.constant 0 : index
    %c0_14 = arith.constant 0 : index
    %9 = vector.load %arg2[%c0_11, %c0_12, %8, %c0_13, %c0_14] : memref<1x1x1x32x256xf32, #tpu.memory_space<vmem>>, vector<1x1x1x32x256xf32>
    %10 = vector.shape_cast %9 : vector<1x1x1x32x256xf32> to vector<32x256xf32>
    %cst = arith.constant dense<0.000000e+00> : vector<128x256xf32>
    %11 = tpu.matmul %3, %10, %cst {dimension_numbers = #tpu.dot_dimension_numbers<[1], [0], [0], [1], [0, 0, 1, 1], [], []>} : vector<128x32xf32>, vector<32x256xf32>, vector<128x256xf32> -> vector<128x256xf32>
    %12 = vector.broadcast %4 : vector<128x1xf32> to vector<128x256xf32>
    %13 = arith.addf %11, %12 : vector<128x256xf32>
    %14 = vector.extract_strided_slice %13 {offsets = [0, 0], sizes = [16, 256], strides = [1, 1]} : vector<128x256xf32> to vector<16x256xf32>
    %c8_i32 = arith.constant 8 : i32
    %15 = arith.muli %c0_i32_10, %c8_i32 : i32
    %c0_i32_15 = arith.constant 0 : i32
    %16 = arith.addi %15, %c0_i32_15 : i32
    %17 = arith.index_cast %16 : i32 to index
    %c0_16 = arith.constant 0 : index
    %c0_17 = arith.constant 0 : index
    %18 = vector.load %arg15[%17, %c0_16, %c0_17] : memref<8x16x256xf32, #tpu.memory_space<vmem>>, vector<1x16x256xf32>
    %19 = vector.shape_cast %18 : vector<1x16x256xf32> to vector<16x256xf32>
    %20 = vector.shape_cast %14 : vector<16x256xf32> to vector<1x16x256xf32>
    tpu.vector_store %arg15[%17, %c0_16, %c0_17], %20 {strides = array<i32>} : memref<8x16x256xf32, #tpu.memory_space<vmem>>, vector<1x16x256xf32>,
    %21 = vector.extract_strided_slice %13 {offsets = [16, 0], sizes = [16, 256], strides = [1, 1]} : vector<128x256xf32> to vector<16x256xf32>
    %c8_i32_18 = arith.constant 8 : i32
    %22 = arith.muli %c0_i32_10, %c8_i32_18 : i32
    %c1_i32 = arith.constant 1 : i32
    %23 = arith.addi %22, %c1_i32 : i32
    %24 = arith.index_cast %23 : i32 to index
    %c0_19 = arith.constant 0 : index
    %c0_20 = arith.constant 0 : index
    %25 = vector.load %arg15[%24, %c0_19, %c0_20] : memref<8x16x256xf32, #tpu.memory_space<vmem>>, vector<1x16x256xf32>
    %26 = vector.shape_cast %25 : vector<1x16x256xf32> to vector<16x256xf32>
    %27 = vector.shape_cast %21 : vector<16x256xf32> to vector<1x16x256xf32>
    tpu.vector_store %arg15[%24, %c0_19, %c0_20], %27 {strides = array<i32>} : memref<8x16x256xf32, #tpu.memory_space<vmem>>, vector<1x16x256xf32>,
    %28 = vector.extract_strided_slice %13 {offsets = [32, 0], sizes = [16, 256], strides = [1, 1]} : vector<128x256xf32> to vector<16x256xf32>
    %c8_i32_21 = arith.constant 8 : i32
    %29 = arith.muli %c0_i32_10, %c8_i32_21 : i32
    %c2_i32 = arith.constant 2 : i32
    %30 = arith.addi %29, %c2_i32 : i32
    %31 = arith.index_cast %30 : i32 to index
    %c0_22 = arith.constant 0 : index
    %c0_23 = arith.constant 0 : index
    %32 = vector.load %arg15[%31, %c0_22, %c0_23] : memref<8x16x256xf32, #tpu.memory_space<vmem>>, vector<1x16x256xf32>
    %33 = vector.shape_cast %32 : vector<1x16x256xf32> to vector<16x256xf32>
    %34 = vector.shape_cast %28 : vector<16x256xf32> to vector<1x16x256xf32>
    tpu.vector_store %arg15[%31, %c0_22, %c0_23], %34 {strides = array<i32>} : memref<8x16x256xf32, #tpu.memory_space<vmem>>, vector<1x16x256xf32>,
    %35 = vector.extract_strided_slice %13 {offsets = [48, 0], sizes = [16, 256], strides = [1, 1]} : vector<128x256xf32> to vector<16x256xf32>
    %c8_i32_24 = arith.constant 8 : i32
    %36 = arith.muli %c0_i32_10, %c8_i32_24 : i32
    %c3_i32 = arith.constant 3 : i32
    %37 = arith.addi %36, %c3_i32 : i32
    %38 = arith.index_cast %37 : i32 to index
    %c0_25 = arith.constant 0 : index
    %c0_26 = arith.constant 0 : index
    %39 = vector.load %arg15[%38, %c0_25, %c0_26] : memref<8x16x256xf32, #tpu.memory_space<vmem>>, vector<1x16x256xf32>
    %40 = vector.shape_cast %39 : vector<1x16x256xf32> to vector<16x256xf32>
    %41 = vector.shape_cast %35 : vector<16x256xf32> to vector<1x16x256xf32>
    tpu.vector_store %arg15[%38, %c0_25, %c0_26], %41 {strides = array<i32>} : memref<8x16x256xf32, #tpu.memory_space<vmem>>, vector<1x16x256xf32>,
    %42 = vector.extract_strided_slice %13 {offsets = [64, 0], sizes = [16, 256], strides = [1, 1]} : vector<128x256xf32> to vector<16x256xf32>
    %c8_i32_27 = arith.constant 8 : i32
    %43 = arith.muli %c0_i32_10, %c8_i32_27 : i32
    %c4_i32 = arith.constant 4 : i32
    %44 = arith.addi %43, %c4_i32 : i32
    %45 = arith.index_cast %44 : i32 to index
    %c0_28 = arith.constant 0 : index
    %c0_29 = arith.constant 0 : index
    %46 = vector.load %arg15[%45, %c0_28, %c0_29] : memref<8x16x256xf32, #tpu.memory_space<vmem>>, vector<1x16x256xf32>
    %47 = vector.shape_cast %46 : vector<1x16x256xf32> to vector<16x256xf32>
    %48 = vector.shape_cast %42 : vector<16x256xf32> to vector<1x16x256xf32>
    tpu.vector_store %arg15[%45, %c0_28, %c0_29], %48 {strides = array<i32>} : memref<8x16x256xf32, #tpu.memory_space<vmem>>, vector<1x16x256xf32>,
    %49 = vector.extract_strided_slice %13 {offsets = [80, 0], sizes = [16, 256], strides = [1, 1]} : vector<128x256xf32> to vector<16x256xf32>
    %c8_i32_30 = arith.constant 8 : i32
    %50 = arith.muli %c0_i32_10, %c8_i32_30 : i32
    %c5_i32 = arith.constant 5 : i32
    %51 = arith.addi %50, %c5_i32 : i32
    %52 = arith.index_cast %51 : i32 to index
    %c0_31 = arith.constant 0 : index
    %c0_32 = arith.constant 0 : index
    %53 = vector.load %arg15[%52, %c0_31, %c0_32] : memref<8x16x256xf32, #tpu.memory_space<vmem>>, vector<1x16x256xf32>
    %54 = vector.shape_cast %53 : vector<1x16x256xf32> to vector<16x256xf32>
    %55 = vector.shape_cast %49 : vector<16x256xf32> to vector<1x16x256xf32>
    tpu.vector_store %arg15[%52, %c0_31, %c0_32], %55 {strides = array<i32>} : memref<8x16x256xf32, #tpu.memory_space<vmem>>, vector<1x16x256xf32>,
    %56 = vector.extract_strided_slice %13 {offsets = [96, 0], sizes = [16, 256], strides = [1, 1]} : vector<128x256xf32> to vector<16x256xf32>
    %c8_i32_33 = arith.constant 8 : i32
    %57 = arith.muli %c0_i32_10, %c8_i32_33 : i32
    %c6_i32 = arith.constant 6 : i32
    %58 = arith.addi %57, %c6_i32 : i32
    %59 = arith.index_cast %58 : i32 to index
    %c0_34 = arith.constant 0 : index
    %c0_35 = arith.constant 0 : index
    %60 = vector.load %arg15[%59, %c0_34, %c0_35] : memref<8x16x256xf32, #tpu.memory_space<vmem>>, vector<1x16x256xf32>
    %61 = vector.shape_cast %60 : vector<1x16x256xf32> to vector<16x256xf32>
    %62 = vector.shape_cast %56 : vector<16x256xf32> to vector<1x16x256xf32>
    tpu.vector_store %arg15[%59, %c0_34, %c0_35], %62 {strides = array<i32>} : memref<8x16x256xf32, #tpu.memory_space<vmem>>, vector<1x16x256xf32>,
    %63 = vector.extract_strided_slice %13 {offsets = [112, 0], sizes = [16, 256], strides = [1, 1]} : vector<128x256xf32> to vector<16x256xf32>
    %c8_i32_36 = arith.constant 8 : i32
    %64 = arith.muli %c0_i32_10, %c8_i32_36 : i32
    %c7_i32 = arith.constant 7 : i32
    %65 = arith.addi %64, %c7_i32 : i32
    %66 = arith.index_cast %65 : i32 to index
    %c0_37 = arith.constant 0 : index
    %c0_38 = arith.constant 0 : index
    %67 = vector.load %arg15[%66, %c0_37, %c0_38] : memref<8x16x256xf32, #tpu.memory_space<vmem>>, vector<1x16x256xf32>
    %68 = vector.shape_cast %67 : vector<1x16x256xf32> to vector<16x256xf32>
    %69 = vector.shape_cast %63 : vector<16x256xf32> to vector<1x16x256xf32>
    tpu.vector_store %arg15[%66, %c0_37, %c0_38], %69 {strides = array<i32>} : memref<8x16x256xf32, #tpu.memory_space<vmem>>, vector<1x16x256xf32>,
    %70 = math.absf %10 : vector<32x256xf32>
    %cst_39 = arith.constant dense<0.000000e+00> : vector<8x256xf32>
    %71 = tpu.matmul %5, %70, %cst_39 {dimension_numbers = #tpu.dot_dimension_numbers<[1], [0], [0], [1], [0, 0, 1, 1], [], []>} : vector<8x32xf32>, vector<32x256xf32>, vector<8x256xf32> -> vector<8x256xf32>
    %cst_40 = arith.constant 0.000000e+00 : f32
    %72 = vector.broadcast %cst_40 : f32 to vector<8x256xf32>
    %73 = arith.cmpf oeq, %71, %72 : vector<8x256xf32>
    %74 = arith.extui %73 : vector<8x256xi1> to vector<8x256xi32>
    %75 = arith.sitofp %74 : vector<8x256xi32> to vector<8x256xf32>
    %cst_41 = arith.constant dense<0.000000e+00> : vector<8x256xf32>
    %76 = tpu.matmul %6, %75, %cst_41 {dimension_numbers = #tpu.dot_dimension_numbers<[1], [0], [0], [1], [0, 0, 1, 1], [], []>} : vector<8x8xf32>, vector<8x256xf32>, vector<8x256xf32> -> vector<8x256xf32>
    %cst_42 = arith.constant 5.000000e-01 : f32
    %77 = vector.broadcast %cst_42 : f32 to vector<8x256xf32>
    %78 = arith.cmpf ogt, %76, %77 : vector<8x256xf32>
    %cst_43 = arith.constant 0.000000e+00 : f32
    %79 = vector.broadcast %cst_43 : f32 to vector<8x256xf32>
    %80 = vector.shape_cast %7 : vector<1x256xf32> to vector<1x256xf32>
    %81 = vector.broadcast %80 : vector<1x256xf32> to vector<8x256xf32>
    %82 = arith.select %78, %79, %81 : vector<8x256xi1>, vector<8x256xf32>
    %83 = arith.index_cast %c0_i32_10 : i32 to index
    %c0_44 = arith.constant 0 : index
    %c0_45 = arith.constant 0 : index
    %84 = vector.load %arg16[%83, %c0_44, %c0_45] : memref<1x8x256xf32, #tpu.memory_space<vmem>>, vector<1x8x256xf32>
    %85 = vector.shape_cast %84 : vector<1x8x256xf32> to vector<8x256xf32>
    %86 = vector.shape_cast %82 : vector<8x256xf32> to vector<1x8x256xf32>
    tpu.vector_store %arg16[%83, %c0_44, %c0_45], %86 {strides = array<i32>} : memref<1x8x256xf32, #tpu.memory_space<vmem>>, vector<1x8x256xf32>,
    %87 = vector.extract_strided_slice %82 {offsets = [7, 0], sizes = [1, 256], strides = [1, 1]} : vector<8x256xf32> to vector<1x256xf32>
    %c1_i32_46 = arith.constant 1 : i32
    %c0_47 = arith.constant 0 : index
    %c0_48 = arith.constant 0 : index
    %88 = vector.load %arg14[%c0_47, %c0_48] : memref<1x256xf32, #tpu.memory_space<vmem>>, vector<1x256xf32>
    tpu.vector_store %arg14[%c0_47, %c0_48], %87 {strides = array<i32>} : memref<1x256xf32, #tpu.memory_space<vmem>>, vector<1x256xf32>,
    %c0_49 = arith.constant 0 : index
    %c0_50 = arith.constant 0 : index
    %89 = vector.load %arg7[%c0_49, %c0_50] : memref<16x16xf32, #tpu.memory_space<vmem>>, vector<16x16xf32>
    %c0_51 = arith.constant 0 : index
    %c0_52 = arith.constant 0 : index
    %90 = vector.load %arg13[%c0_51, %c0_52] : memref<16x256xf32, #tpu.memory_space<vmem>>, vector<16x128xf32>
    %c0_53 = arith.constant 0 : index
    %c128 = arith.constant 128 : index
    %91 = vector.load %arg13[%c0_53, %c128] : memref<16x256xf32, #tpu.memory_space<vmem>>, vector<16x128xf32>
    %c0_i32_54 = arith.constant 0 : i32
    %92 = arith.index_cast %c0_i32_54 : i32 to index
    %c0_55 = arith.constant 0 : index
    %c0_56 = arith.constant 0 : index
    %93 = vector.load %arg16[%92, %c0_55, %c0_56] : memref<1x8x256xf32, #tpu.memory_space<vmem>>, vector<1x8x256xf32>
    %94 = vector.shape_cast %93 : vector<1x8x256xf32> to vector<8x256xf32>
    %c8_i32_57 = arith.constant 8 : i32
    %95 = arith.muli %c0_i32_54, %c8_i32_57 : i32
    %c0_i32_58 = arith.constant 0 : i32
    %96 = arith.addi %95, %c0_i32_58 : i32
    %97 = arith.index_cast %96 : i32 to index
    %c0_59 = arith.constant 0 : index
    %c0_60 = arith.constant 0 : index
    %98 = vector.load %arg15[%97, %c0_59, %c0_60] : memref<8x16x256xf32, #tpu.memory_space<vmem>>, vector<1x16x256xf32>
    %99 = vector.shape_cast %98 : vector<1x16x256xf32> to vector<16x256xf32>
    %100 = vector.extract_strided_slice %94 {offsets = [0, 0], sizes = [1, 256], strides = [1, 1]} : vector<8x256xf32> to vector<1x256xf32>
    %cst_61 = arith.constant dense<0.000000e+00> : vector<16x128xf32>
    %101 = tpu.matmul %89, %90, %cst_61 {dimension_numbers = #tpu.dot_dimension_numbers<[1], [0], [0], [1], [0, 0, 1, 1], [], []>} : vector<16x16xf32>, vector<16x128xf32>, vector<16x128xf32> -> vector<16x128xf32>
    %102 = vector.extract_strided_slice %99 {offsets = [0, 0], sizes = [16, 128], strides = [1, 1]} : vector<16x256xf32> to vector<16x128xf32>
    %103 = arith.addf %101, %102 : vector<16x128xf32>
    %104 = math.tanh %103 : vector<16x128xf32>
    %105 = vector.extract_strided_slice %100 {offsets = [0, 0], sizes = [1, 128], strides = [1, 1]} : vector<1x256xf32> to vector<1x128xf32>
    %cst_62 = arith.constant 0.000000e+00 : f32
    %106 = vector.broadcast %cst_62 : f32 to vector<1x128xf32>
    %107 = arith.cmpf ogt, %105, %106 : vector<1x128xf32>
    %108 = vector.shape_cast %107 : vector<1x128xi1> to vector<1x128xi1>
    %109 = vector.broadcast %108 : vector<1x128xi1> to vector<16x128xi1>
    %110 = arith.select %109, %104, %90 : vector<16x128xi1>, vector<16x128xf32>
    %cst_63 = arith.constant dense<0.000000e+00> : vector<16x128xf32>
    %111 = tpu.matmul %89, %91, %cst_63 {dimension_numbers = #tpu.dot_dimension_numbers<[1], [0], [0], [1], [0, 0, 1, 1], [], []>} : vector<16x16xf32>, vector<16x128xf32>, vector<16x128xf32> -> vector<16x128xf32>
    %112 = vector.extract_strided_slice %99 {offsets = [0, 128], sizes = [16, 128], strides = [1, 1]} : vector<16x256xf32> to vector<16x128xf32>
    %113 = arith.addf %111, %112 : vector<16x128xf32>
    %114 = math.tanh %113 : vector<16x128xf32>
    %115 = vector.extract_strided_slice %100 {offsets = [0, 128], sizes = [1, 128], strides = [1, 1]} : vector<1x256xf32> to vector<1x128xf32>
    %cst_64 = arith.constant 0.000000e+00 : f32
    %116 = vector.broadcast %cst_64 : f32 to vector<1x128xf32>
    %117 = arith.cmpf ogt, %115, %116 : vector<1x128xf32>
    %118 = vector.shape_cast %117 : vector<1x128xi1> to vector<1x128xi1>
    %119 = vector.broadcast %118 : vector<1x128xi1> to vector<16x128xi1>
    %120 = arith.select %119, %114, %91 : vector<16x128xi1>, vector<16x128xf32>
    %c8_i32_65 = arith.constant 8 : i32
    %121 = arith.muli %c0_i32_54, %c8_i32_65 : i32
    %c1_i32_66 = arith.constant 1 : i32
    %122 = arith.addi %121, %c1_i32_66 : i32
    %123 = arith.index_cast %122 : i32 to index
    %c0_67 = arith.constant 0 : index
    %c0_68 = arith.constant 0 : index
    %124 = vector.load %arg15[%123, %c0_67, %c0_68] : memref<8x16x256xf32, #tpu.memory_space<vmem>>, vector<1x16x256xf32>
    %125 = vector.shape_cast %124 : vector<1x16x256xf32> to vector<16x256xf32>
    %126 = vector.extract_strided_slice %94 {offsets = [1, 0], sizes = [1, 256], strides = [1, 1]} : vector<8x256xf32> to vector<1x256xf32>
    %cst_69 = arith.constant dense<0.000000e+00> : vector<16x128xf32>
    %127 = tpu.matmul %89, %110, %cst_69 {dimension_numbers = #tpu.dot_dimension_numbers<[1], [0], [0], [1], [0, 0, 1, 1], [], []>} : vector<16x16xf32>, vector<16x128xf32>, vector<16x128xf32> -> vector<16x128xf32>
    %128 = vector.extract_strided_slice %125 {offsets = [0, 0], sizes = [16, 128], strides = [1, 1]} : vector<16x256xf32> to vector<16x128xf32>
    %129 = arith.addf %127, %128 : vector<16x128xf32>
    %130 = math.tanh %129 : vector<16x128xf32>
    %131 = vector.extract_strided_slice %126 {offsets = [0, 0], sizes = [1, 128], strides = [1, 1]} : vector<1x256xf32> to vector<1x128xf32>
    %cst_70 = arith.constant 0.000000e+00 : f32
    %132 = vector.broadcast %cst_70 : f32 to vector<1x128xf32>
    %133 = arith.cmpf ogt, %131, %132 : vector<1x128xf32>
    %134 = vector.shape_cast %133 : vector<1x128xi1> to vector<1x128xi1>
    %135 = vector.broadcast %134 : vector<1x128xi1> to vector<16x128xi1>
    %136 = arith.select %135, %130, %110 : vector<16x128xi1>, vector<16x128xf32>
    %cst_71 = arith.constant dense<0.000000e+00> : vector<16x128xf32>
    %137 = tpu.matmul %89, %120, %cst_71 {dimension_numbers = #tpu.dot_dimension_numbers<[1], [0], [0], [1], [0, 0, 1, 1], [], []>} : vector<16x16xf32>, vector<16x128xf32>, vector<16x128xf32> -> vector<16x128xf32>
    %138 = vector.extract_strided_slice %125 {offsets = [0, 128], sizes = [16, 128], strides = [1, 1]} : vector<16x256xf32> to vector<16x128xf32>
    %139 = arith.addf %137, %138 : vector<16x128xf32>
    %140 = math.tanh %139 : vector<16x128xf32>
    %141 = vector.extract_strided_slice %126 {offsets = [0, 128], sizes = [1, 128], strides = [1, 1]} : vector<1x256xf32> to vector<1x128xf32>
    %cst_72 = arith.constant 0.000000e+00 : f32
    %142 = vector.broadcast %cst_72 : f32 to vector<1x128xf32>
    %143 = arith.cmpf ogt, %141, %142 : vector<1x128xf32>
    %144 = vector.shape_cast %143 : vector<1x128xi1> to vector<1x128xi1>
    %145 = vector.broadcast %144 : vector<1x128xi1> to vector<16x128xi1>
    %146 = arith.select %145, %140, %120 : vector<16x128xi1>, vector<16x128xf32>
    %c8_i32_73 = arith.constant 8 : i32
    %147 = arith.muli %c0_i32_54, %c8_i32_73 : i32
    %c2_i32_74 = arith.constant 2 : i32
    %148 = arith.addi %147, %c2_i32_74 : i32
    %149 = arith.index_cast %148 : i32 to index
    %c0_75 = arith.constant 0 : index
    %c0_76 = arith.constant 0 : index
    %150 = vector.load %arg15[%149, %c0_75, %c0_76] : memref<8x16x256xf32, #tpu.memory_space<vmem>>, vector<1x16x256xf32>
    %151 = vector.shape_cast %150 : vector<1x16x256xf32> to vector<16x256xf32>
    %152 = vector.extract_strided_slice %94 {offsets = [2, 0], sizes = [1, 256], strides = [1, 1]} : vector<8x256xf32> to vector<1x256xf32>
    %cst_77 = arith.constant dense<0.000000e+00> : vector<16x128xf32>
    %153 = tpu.matmul %89, %136, %cst_77 {dimension_numbers = #tpu.dot_dimension_numbers<[1], [0], [0], [1], [0, 0, 1, 1], [], []>} : vector<16x16xf32>, vector<16x128xf32>, vector<16x128xf32> -> vector<16x128xf32>
    %154 = vector.extract_strided_slice %151 {offsets = [0, 0], sizes = [16, 128], strides = [1, 1]} : vector<16x256xf32> to vector<16x128xf32>
    %155 = arith.addf %153, %154 : vector<16x128xf32>
    %156 = math.tanh %155 : vector<16x128xf32>
    %157 = vector.extract_strided_slice %152 {offsets = [0, 0], sizes = [1, 128], strides = [1, 1]} : vector<1x256xf32> to vector<1x128xf32>
    %cst_78 = arith.constant 0.000000e+00 : f32
    %158 = vector.broadcast %cst_78 : f32 to vector<1x128xf32>
    %159 = arith.cmpf ogt, %157, %158 : vector<1x128xf32>
    %160 = vector.shape_cast %159 : vector<1x128xi1> to vector<1x128xi1>
    %161 = vector.broadcast %160 : vector<1x128xi1> to vector<16x128xi1>
    %162 = arith.select %161, %156, %136 : vector<16x128xi1>, vector<16x128xf32>
    %cst_79 = arith.constant dense<0.000000e+00> : vector<16x128xf32>
    %163 = tpu.matmul %89, %146, %cst_79 {dimension_numbers = #tpu.dot_dimension_numbers<[1], [0], [0], [1], [0, 0, 1, 1], [], []>} : vector<16x16xf32>, vector<16x128xf32>, vector<16x128xf32> -> vector<16x128xf32>
    %164 = vector.extract_strided_slice %151 {offsets = [0, 128], sizes = [16, 128], strides = [1, 1]} : vector<16x256xf32> to vector<16x128xf32>
    %165 = arith.addf %163, %164 : vector<16x128xf32>
    %166 = math.tanh %165 : vector<16x128xf32>
    %167 = vector.extract_strided_slice %152 {offsets = [0, 128], sizes = [1, 128], strides = [1, 1]} : vector<1x256xf32> to vector<1x128xf32>
    %cst_80 = arith.constant 0.000000e+00 : f32
    %168 = vector.broadcast %cst_80 : f32 to vector<1x128xf32>
    %169 = arith.cmpf ogt, %167, %168 : vector<1x128xf32>
    %170 = vector.shape_cast %169 : vector<1x128xi1> to vector<1x128xi1>
    %171 = vector.broadcast %170 : vector<1x128xi1> to vector<16x128xi1>
    %172 = arith.select %171, %166, %146 : vector<16x128xi1>, vector<16x128xf32>
    %c8_i32_81 = arith.constant 8 : i32
    %173 = arith.muli %c0_i32_54, %c8_i32_81 : i32
    %c3_i32_82 = arith.constant 3 : i32
    %174 = arith.addi %173, %c3_i32_82 : i32
    %175 = arith.index_cast %174 : i32 to index
    %c0_83 = arith.constant 0 : index
    %c0_84 = arith.constant 0 : index
    %176 = vector.load %arg15[%175, %c0_83, %c0_84] : memref<8x16x256xf32, #tpu.memory_space<vmem>>, vector<1x16x256xf32>
    %177 = vector.shape_cast %176 : vector<1x16x256xf32> to vector<16x256xf32>
    %178 = vector.extract_strided_slice %94 {offsets = [3, 0], sizes = [1, 256], strides = [1, 1]} : vector<8x256xf32> to vector<1x256xf32>
    %cst_85 = arith.constant dense<0.000000e+00> : vector<16x128xf32>
    %179 = tpu.matmul %89, %162, %cst_85 {dimension_numbers = #tpu.dot_dimension_numbers<[1], [0], [0], [1], [0, 0, 1, 1], [], []>} : vector<16x16xf32>, vector<16x128xf32>, vector<16x128xf32> -> vector<16x128xf32>
    %180 = vector.extract_strided_slice %177 {offsets = [0, 0], sizes = [16, 128], strides = [1, 1]} : vector<16x256xf32> to vector<16x128xf32>
    %181 = arith.addf %179, %180 : vector<16x128xf32>
    %182 = math.tanh %181 : vector<16x128xf32>
    %183 = vector.extract_strided_slice %178 {offsets = [0, 0], sizes = [1, 128], strides = [1, 1]} : vector<1x256xf32> to vector<1x128xf32>
    %cst_86 = arith.constant 0.000000e+00 : f32
    %184 = vector.broadcast %cst_86 : f32 to vector<1x128xf32>
    %185 = arith.cmpf ogt, %183, %184 : vector<1x128xf32>
    %186 = vector.shape_cast %185 : vector<1x128xi1> to vector<1x128xi1>
    %187 = vector.broadcast %186 : vector<1x128xi1> to vector<16x128xi1>
    %188 = arith.select %187, %182, %162 : vector<16x128xi1>, vector<16x128xf32>
    %cst_87 = arith.constant dense<0.000000e+00> : vector<16x128xf32>
    %189 = tpu.matmul %89, %172, %cst_87 {dimension_numbers = #tpu.dot_dimension_numbers<[1], [0], [0], [1], [0, 0, 1, 1], [], []>} : vector<16x16xf32>, vector<16x128xf32>, vector<16x128xf32> -> vector<16x128xf32>
    %190 = vector.extract_strided_slice %177 {offsets = [0, 128], sizes = [16, 128], strides = [1, 1]} : vector<16x256xf32> to vector<16x128xf32>
    %191 = arith.addf %189, %190 : vector<16x128xf32>
    %192 = math.tanh %191 : vector<16x128xf32>
    %193 = vector.extract_strided_slice %178 {offsets = [0, 128], sizes = [1, 128], strides = [1, 1]} : vector<1x256xf32> to vector<1x128xf32>
    %cst_88 = arith.constant 0.000000e+00 : f32
    %194 = vector.broadcast %cst_88 : f32 to vector<1x128xf32>
    %195 = arith.cmpf ogt, %193, %194 : vector<1x128xf32>
    %196 = vector.shape_cast %195 : vector<1x128xi1> to vector<1x128xi1>
    %197 = vector.broadcast %196 : vector<1x128xi1> to vector<16x128xi1>
    %198 = arith.select %197, %192, %172 : vector<16x128xi1>, vector<16x128xf32>
    %c8_i32_89 = arith.constant 8 : i32
    %199 = arith.muli %c0_i32_54, %c8_i32_89 : i32
    %c4_i32_90 = arith.constant 4 : i32
    %200 = arith.addi %199, %c4_i32_90 : i32
    %201 = arith.index_cast %200 : i32 to index
    %c0_91 = arith.constant 0 : index
    %c0_92 = arith.constant 0 : index
    %202 = vector.load %arg15[%201, %c0_91, %c0_92] : memref<8x16x256xf32, #tpu.memory_space<vmem>>, vector<1x16x256xf32>
    %203 = vector.shape_cast %202 : vector<1x16x256xf32> to vector<16x256xf32>
    %204 = vector.extract_strided_slice %94 {offsets = [4, 0], sizes = [1, 256], strides = [1, 1]} : vector<8x256xf32> to vector<1x256xf32>
    %cst_93 = arith.constant dense<0.000000e+00> : vector<16x128xf32>
    %205 = tpu.matmul %89, %188, %cst_93 {dimension_numbers = #tpu.dot_dimension_numbers<[1], [0], [0], [1], [0, 0, 1, 1], [], []>} : vector<16x16xf32>, vector<16x128xf32>, vector<16x128xf32> -> vector<16x128xf32>
    %206 = vector.extract_strided_slice %203 {offsets = [0, 0], sizes = [16, 128], strides = [1, 1]} : vector<16x256xf32> to vector<16x128xf32>
    %207 = arith.addf %205, %206 : vector<16x128xf32>
    %208 = math.tanh %207 : vector<16x128xf32>
    %209 = vector.extract_strided_slice %204 {offsets = [0, 0], sizes = [1, 128], strides = [1, 1]} : vector<1x256xf32> to vector<1x128xf32>
    %cst_94 = arith.constant 0.000000e+00 : f32
    %210 = vector.broadcast %cst_94 : f32 to vector<1x128xf32>
    %211 = arith.cmpf ogt, %209, %210 : vector<1x128xf32>
    %212 = vector.shape_cast %211 : vector<1x128xi1> to vector<1x128xi1>
    %213 = vector.broadcast %212 : vector<1x128xi1> to vector<16x128xi1>
    %214 = arith.select %213, %208, %188 : vector<16x128xi1>, vector<16x128xf32>
    %cst_95 = arith.constant dense<0.000000e+00> : vector<16x128xf32>
    %215 = tpu.matmul %89, %198, %cst_95 {dimension_numbers = #tpu.dot_dimension_numbers<[1], [0], [0], [1], [0, 0, 1, 1], [], []>} : vector<16x16xf32>, vector<16x128xf32>, vector<16x128xf32> -> vector<16x128xf32>
    %216 = vector.extract_strided_slice %203 {offsets = [0, 128], sizes = [16, 128], strides = [1, 1]} : vector<16x256xf32> to vector<16x128xf32>
    %217 = arith.addf %215, %216 : vector<16x128xf32>
    %218 = math.tanh %217 : vector<16x128xf32>
    %219 = vector.extract_strided_slice %204 {offsets = [0, 128], sizes = [1, 128], strides = [1, 1]} : vector<1x256xf32> to vector<1x128xf32>
    %cst_96 = arith.constant 0.000000e+00 : f32
    %220 = vector.broadcast %cst_96 : f32 to vector<1x128xf32>
    %221 = arith.cmpf ogt, %219, %220 : vector<1x128xf32>
    %222 = vector.shape_cast %221 : vector<1x128xi1> to vector<1x128xi1>
    %223 = vector.broadcast %222 : vector<1x128xi1> to vector<16x128xi1>
    %224 = arith.select %223, %218, %198 : vector<16x128xi1>, vector<16x128xf32>
    %c8_i32_97 = arith.constant 8 : i32
    %225 = arith.muli %c0_i32_54, %c8_i32_97 : i32
    %c5_i32_98 = arith.constant 5 : i32
    %226 = arith.addi %225, %c5_i32_98 : i32
    %227 = arith.index_cast %226 : i32 to index
    %c0_99 = arith.constant 0 : index
    %c0_100 = arith.constant 0 : index
    %228 = vector.load %arg15[%227, %c0_99, %c0_100] : memref<8x16x256xf32, #tpu.memory_space<vmem>>, vector<1x16x256xf32>
    %229 = vector.shape_cast %228 : vector<1x16x256xf32> to vector<16x256xf32>
    %230 = vector.extract_strided_slice %94 {offsets = [5, 0], sizes = [1, 256], strides = [1, 1]} : vector<8x256xf32> to vector<1x256xf32>
    %cst_101 = arith.constant dense<0.000000e+00> : vector<16x128xf32>
    %231 = tpu.matmul %89, %214, %cst_101 {dimension_numbers = #tpu.dot_dimension_numbers<[1], [0], [0], [1], [0, 0, 1, 1], [], []>} : vector<16x16xf32>, vector<16x128xf32>, vector<16x128xf32> -> vector<16x128xf32>
    %232 = vector.extract_strided_slice %229 {offsets = [0, 0], sizes = [16, 128], strides = [1, 1]} : vector<16x256xf32> to vector<16x128xf32>
    %233 = arith.addf %231, %232 : vector<16x128xf32>
    %234 = math.tanh %233 : vector<16x128xf32>
    %235 = vector.extract_strided_slice %230 {offsets = [0, 0], sizes = [1, 128], strides = [1, 1]} : vector<1x256xf32> to vector<1x128xf32>
    %cst_102 = arith.constant 0.000000e+00 : f32
    %236 = vector.broadcast %cst_102 : f32 to vector<1x128xf32>
    %237 = arith.cmpf ogt, %235, %236 : vector<1x128xf32>
    %238 = vector.shape_cast %237 : vector<1x128xi1> to vector<1x128xi1>
    %239 = vector.broadcast %238 : vector<1x128xi1> to vector<16x128xi1>
    %240 = arith.select %239, %234, %214 : vector<16x128xi1>, vector<16x128xf32>
    %cst_103 = arith.constant dense<0.000000e+00> : vector<16x128xf32>
    %241 = tpu.matmul %89, %224, %cst_103 {dimension_numbers = #tpu.dot_dimension_numbers<[1], [0], [0], [1], [0, 0, 1, 1], [], []>} : vector<16x16xf32>, vector<16x128xf32>, vector<16x128xf32> -> vector<16x128xf32>
    %242 = vector.extract_strided_slice %229 {offsets = [0, 128], sizes = [16, 128], strides = [1, 1]} : vector<16x256xf32> to vector<16x128xf32>
    %243 = arith.addf %241, %242 : vector<16x128xf32>
    %244 = math.tanh %243 : vector<16x128xf32>
    %245 = vector.extract_strided_slice %230 {offsets = [0, 128], sizes = [1, 128], strides = [1, 1]} : vector<1x256xf32> to vector<1x128xf32>
    %cst_104 = arith.constant 0.000000e+00 : f32
    %246 = vector.broadcast %cst_104 : f32 to vector<1x128xf32>
    %247 = arith.cmpf ogt, %245, %246 : vector<1x128xf32>
    %248 = vector.shape_cast %247 : vector<1x128xi1> to vector<1x128xi1>
    %249 = vector.broadcast %248 : vector<1x128xi1> to vector<16x128xi1>
    %250 = arith.select %249, %244, %224 : vector<16x128xi1>, vector<16x128xf32>
    %c8_i32_105 = arith.constant 8 : i32
    %251 = arith.muli %c0_i32_54, %c8_i32_105 : i32
    %c6_i32_106 = arith.constant 6 : i32
    %252 = arith.addi %251, %c6_i32_106 : i32
    %253 = arith.index_cast %252 : i32 to index
    %c0_107 = arith.constant 0 : index
    %c0_108 = arith.constant 0 : index
    %254 = vector.load %arg15[%253, %c0_107, %c0_108] : memref<8x16x256xf32, #tpu.memory_space<vmem>>, vector<1x16x256xf32>
    %255 = vector.shape_cast %254 : vector<1x16x256xf32> to vector<16x256xf32>
    %256 = vector.extract_strided_slice %94 {offsets = [6, 0], sizes = [1, 256], strides = [1, 1]} : vector<8x256xf32> to vector<1x256xf32>
    %cst_109 = arith.constant dense<0.000000e+00> : vector<16x128xf32>
    %257 = tpu.matmul %89, %240, %cst_109 {dimension_numbers = #tpu.dot_dimension_numbers<[1], [0], [0], [1], [0, 0, 1, 1], [], []>} : vector<16x16xf32>, vector<16x128xf32>, vector<16x128xf32> -> vector<16x128xf32>
    %258 = vector.extract_strided_slice %255 {offsets = [0, 0], sizes = [16, 128], strides = [1, 1]} : vector<16x256xf32> to vector<16x128xf32>
    %259 = arith.addf %257, %258 : vector<16x128xf32>
    %260 = math.tanh %259 : vector<16x128xf32>
    %261 = vector.extract_strided_slice %256 {offsets = [0, 0], sizes = [1, 128], strides = [1, 1]} : vector<1x256xf32> to vector<1x128xf32>
    %cst_110 = arith.constant 0.000000e+00 : f32
    %262 = vector.broadcast %cst_110 : f32 to vector<1x128xf32>
    %263 = arith.cmpf ogt, %261, %262 : vector<1x128xf32>
    %264 = vector.shape_cast %263 : vector<1x128xi1> to vector<1x128xi1>
    %265 = vector.broadcast %264 : vector<1x128xi1> to vector<16x128xi1>
    %266 = arith.select %265, %260, %240 : vector<16x128xi1>, vector<16x128xf32>
    %cst_111 = arith.constant dense<0.000000e+00> : vector<16x128xf32>
    %267 = tpu.matmul %89, %250, %cst_111 {dimension_numbers = #tpu.dot_dimension_numbers<[1], [0], [0], [1], [0, 0, 1, 1], [], []>} : vector<16x16xf32>, vector<16x128xf32>, vector<16x128xf32> -> vector<16x128xf32>
    %268 = vector.extract_strided_slice %255 {offsets = [0, 128], sizes = [16, 128], strides = [1, 1]} : vector<16x256xf32> to vector<16x128xf32>
    %269 = arith.addf %267, %268 : vector<16x128xf32>
    %270 = math.tanh %269 : vector<16x128xf32>
    %271 = vector.extract_strided_slice %256 {offsets = [0, 128], sizes = [1, 128], strides = [1, 1]} : vector<1x256xf32> to vector<1x128xf32>
    %cst_112 = arith.constant 0.000000e+00 : f32
    %272 = vector.broadcast %cst_112 : f32 to vector<1x128xf32>
    %273 = arith.cmpf ogt, %271, %272 : vector<1x128xf32>
    %274 = vector.shape_cast %273 : vector<1x128xi1> to vector<1x128xi1>
    %275 = vector.broadcast %274 : vector<1x128xi1> to vector<16x128xi1>
    %276 = arith.select %275, %270, %250 : vector<16x128xi1>, vector<16x128xf32>
    %c8_i32_113 = arith.constant 8 : i32
    %277 = arith.muli %c0_i32_54, %c8_i32_113 : i32
    %c7_i32_114 = arith.constant 7 : i32
    %278 = arith.addi %277, %c7_i32_114 : i32
    %279 = arith.index_cast %278 : i32 to index
    %c0_115 = arith.constant 0 : index
    %c0_116 = arith.constant 0 : index
    %280 = vector.load %arg15[%279, %c0_115, %c0_116] : memref<8x16x256xf32, #tpu.memory_space<vmem>>, vector<1x16x256xf32>
    %281 = vector.shape_cast %280 : vector<1x16x256xf32> to vector<16x256xf32>
    %282 = vector.extract_strided_slice %94 {offsets = [7, 0], sizes = [1, 256], strides = [1, 1]} : vector<8x256xf32> to vector<1x256xf32>
    %cst_117 = arith.constant dense<0.000000e+00> : vector<16x128xf32>
    %283 = tpu.matmul %89, %266, %cst_117 {dimension_numbers = #tpu.dot_dimension_numbers<[1], [0], [0], [1], [0, 0, 1, 1], [], []>} : vector<16x16xf32>, vector<16x128xf32>, vector<16x128xf32> -> vector<16x128xf32>
    %284 = vector.extract_strided_slice %281 {offsets = [0, 0], sizes = [16, 128], strides = [1, 1]} : vector<16x256xf32> to vector<16x128xf32>
    %285 = arith.addf %283, %284 : vector<16x128xf32>
    %286 = math.tanh %285 : vector<16x128xf32>
    %287 = vector.extract_strided_slice %282 {offsets = [0, 0], sizes = [1, 128], strides = [1, 1]} : vector<1x256xf32> to vector<1x128xf32>
    %cst_118 = arith.constant 0.000000e+00 : f32
    %288 = vector.broadcast %cst_118 : f32 to vector<1x128xf32>
    %289 = arith.cmpf ogt, %287, %288 : vector<1x128xf32>
    %290 = vector.shape_cast %289 : vector<1x128xi1> to vector<1x128xi1>
    %291 = vector.broadcast %290 : vector<1x128xi1> to vector<16x128xi1>
    %292 = arith.select %291, %286, %266 : vector<16x128xi1>, vector<16x128xf32>
    %cst_119 = arith.constant dense<0.000000e+00> : vector<16x128xf32>
    %293 = tpu.matmul %89, %276, %cst_119 {dimension_numbers = #tpu.dot_dimension_numbers<[1], [0], [0], [1], [0, 0, 1, 1], [], []>} : vector<16x16xf32>, vector<16x128xf32>, vector<16x128xf32> -> vector<16x128xf32>
    %294 = vector.extract_strided_slice %281 {offsets = [0, 128], sizes = [16, 128], strides = [1, 1]} : vector<16x256xf32> to vector<16x128xf32>
    %295 = arith.addf %293, %294 : vector<16x128xf32>
    %296 = math.tanh %295 : vector<16x128xf32>
    %297 = vector.extract_strided_slice %282 {offsets = [0, 128], sizes = [1, 128], strides = [1, 1]} : vector<1x256xf32> to vector<1x128xf32>
    %cst_120 = arith.constant 0.000000e+00 : f32
    %298 = vector.broadcast %cst_120 : f32 to vector<1x128xf32>
    %299 = arith.cmpf ogt, %297, %298 : vector<1x128xf32>
    %300 = vector.shape_cast %299 : vector<1x128xi1> to vector<1x128xi1>
    %301 = vector.broadcast %300 : vector<1x128xi1> to vector<16x128xi1>
    %302 = arith.select %301, %296, %276 : vector<16x128xi1>, vector<16x128xf32>
    %c1_i32_121 = arith.constant 1 : i32
    %c0_122 = arith.constant 0 : index
    %c0_123 = arith.constant 0 : index
    %303 = vector.load %arg13[%c0_122, %c0_123] : memref<16x256xf32, #tpu.memory_space<vmem>>, vector<16x128xf32>
    tpu.vector_store %arg13[%c0_122, %c0_123], %292 {strides = array<i32>} : memref<16x256xf32, #tpu.memory_space<vmem>>, vector<16x128xf32>,
    %c0_124 = arith.constant 0 : index
    %c128_125 = arith.constant 128 : index
    %304 = vector.load %arg13[%c0_124, %c128_125] : memref<16x256xf32, #tpu.memory_space<vmem>>, vector<16x128xf32>
    tpu.vector_store %arg13[%c0_124, %c128_125], %302 {strides = array<i32>} : memref<16x256xf32, #tpu.memory_space<vmem>>, vector<16x128xf32>,
    %c0_i32_126 = arith.constant 0 : i32
    %305 = arith.cmpi eq, %arg1, %c0_i32_126 : i32
    %306 = arith.extui %305 : i1 to i32
    %c0_i32_127 = arith.constant 0 : i32
    %307 = arith.cmpi ne, %306, %c0_i32_127 : i32
    scf.if %307 {
      %c0_128 = arith.constant 0 : index
      %c0_129 = arith.constant 0 : index
      %308 = vector.load %arg13[%c0_128, %c0_129] : memref<16x256xf32, #tpu.memory_space<vmem>>, vector<16x256xf32>
      %c0_130 = arith.constant 0 : index
      %c0_131 = arith.constant 0 : index
      %309 = vector.load %arg8[%c0_130, %c0_131] : memref<64x16xf32, #tpu.memory_space<vmem>>, vector<64x16xf32>
      %cst_132 = arith.constant dense<0.000000e+00> : vector<64x256xf32>
      %310 = tpu.matmul %309, %308, %cst_132 {dimension_numbers = #tpu.dot_dimension_numbers<[1], [0], [0], [1], [0, 0, 1, 1], [], []>} : vector<64x16xf32>, vector<16x256xf32>, vector<64x256xf32> -> vector<64x256xf32>
      %c0_133 = arith.constant 0 : index
      %c0_134 = arith.constant 0 : index
      %311 = vector.load %arg9[%c0_133, %c0_134] : memref<64x1xf32, #tpu.memory_space<vmem>>, vector<64x1xf32>
      %312 = vector.broadcast %311 : vector<64x1xf32> to vector<64x256xf32>
      %313 = arith.addf %310, %312 : vector<64x256xf32>
      %314 = math.tanh %313 : vector<64x256xf32>
      %c0_135 = arith.constant 0 : index
      %c0_136 = arith.constant 0 : index
      %315 = vector.load %arg10[%c0_135, %c0_136] : memref<2x64xf32, #tpu.memory_space<vmem>>, vector<2x64xf32>
      %cst_137 = arith.constant dense<0.000000e+00> : vector<2x256xf32>
      %316 = tpu.matmul %315, %314, %cst_137 {dimension_numbers = #tpu.dot_dimension_numbers<[1], [0], [0], [1], [0, 0, 1, 1], [], []>} : vector<2x64xf32>, vector<64x256xf32>, vector<2x256xf32> -> vector<2x256xf32>
      %c0_138 = arith.constant 0 : index
      %c0_139 = arith.constant 0 : index
      %317 = vector.load %arg11[%c0_138, %c0_139] : memref<2x1xf32, #tpu.memory_space<vmem>>, vector<2x1xf32>
      %318 = vector.broadcast %317 : vector<2x1xf32> to vector<2x256xf32>
      %319 = arith.addf %316, %318 : vector<2x256xf32>
      %cst_140 = arith.constant dense<0xFF800000> : vector<256xf32>
      %320 = vector.multi_reduction <maximumf>, %319, %cst_140 [0] : vector<2x256xf32> to vector<256xf32>
      %321 = vector.shape_cast %320 : vector<256xf32> to vector<1x256xf32>
      %322 = vector.broadcast %321 : vector<1x256xf32> to vector<2x256xf32>
      %323 = arith.subf %319, %322 : vector<2x256xf32>
      %324 = math.exp %323 : vector<2x256xf32>
      %cst_141 = arith.constant dense<0.000000e+00> : vector<256xf32>
      %325 = vector.multi_reduction <add>, %324, %cst_141 [0] : vector<2x256xf32> to vector<256xf32>
      %326 = vector.shape_cast %325 : vector<256xf32> to vector<1x256xf32>
      %327 = tpu.reciprocal %326 {approx = true} : vector<1x256xf32> -> vector<1x256xf32>
      %328 = vector.broadcast %327 : vector<1x256xf32> to vector<2x256xf32>
      %329 = arith.mulf %324, %328 : vector<2x256xf32>
      %c0_142 = arith.constant 0 : index
      %c0_143 = arith.constant 0 : index
      %330 = vector.load %arg12[%c0_142, %c0_143] : memref<2x256xf32, #tpu.memory_space<vmem>>, vector<2x256xf32>
      tpu.vector_store %arg12[%c0_142, %c0_143], %329 {strides = array<i32>} : memref<2x256xf32, #tpu.memory_space<vmem>>, vector<2x256xf32>,
    } else {
    }
    return
  }
  func.func @transform_0(%arg0: i32, %arg1: i32) -> (i32, i32, i32, i32, i32) {
    %c0_i32 = arith.constant 0 : i32
    %c0_i32_0 = arith.constant 0 : i32
    %c0_i32_1 = arith.constant 0 : i32
    %c0_i32_2 = arith.constant 0 : i32
    return %arg0, %arg1, %c0_i32, %c0_i32_0, %c0_i32_1 : i32, i32, i32, i32, i32
  }
  func.func @transform_1(%arg0: i32, %arg1: i32) -> (i32, i32) {
    %c0_i32 = arith.constant 0 : i32
    %c0_i32_0 = arith.constant 0 : i32
    %c0_i32_1 = arith.constant 0 : i32
    return %c0_i32, %c0_i32_0 : i32, i32
  }
  func.func @transform_2(%arg0: i32, %arg1: i32) -> (i32, i32) {
    %c0_i32 = arith.constant 0 : i32
    %c0_i32_0 = arith.constant 0 : i32
    %c0_i32_1 = arith.constant 0 : i32
    return %c0_i32, %c0_i32_0 : i32, i32
  }
  func.func @transform_3(%arg0: i32, %arg1: i32) -> (i32, i32) {
    %c0_i32 = arith.constant 0 : i32
    %c0_i32_0 = arith.constant 0 : i32
    %c0_i32_1 = arith.constant 0 : i32
    return %c0_i32, %c0_i32_0 : i32, i32
  }
  func.func @transform_4(%arg0: i32, %arg1: i32) -> (i32, i32) {
    %c0_i32 = arith.constant 0 : i32
    %c0_i32_0 = arith.constant 0 : i32
    %c0_i32_1 = arith.constant 0 : i32
    return %c0_i32, %c0_i32_0 : i32, i32
  }
  func.func @transform_5(%arg0: i32, %arg1: i32) -> (i32, i32) {
    %c0_i32 = arith.constant 0 : i32
    %c0_i32_0 = arith.constant 0 : i32
    %c0_i32_1 = arith.constant 0 : i32
    return %c0_i32, %c0_i32_0 : i32, i32
  }
  func.func @transform_6(%arg0: i32, %arg1: i32) -> (i32, i32) {
    %c0_i32 = arith.constant 0 : i32
    %c0_i32_0 = arith.constant 0 : i32
    %c0_i32_1 = arith.constant 0 : i32
    return %c0_i32, %c0_i32_0 : i32, i32
  }
  func.func @transform_7(%arg0: i32, %arg1: i32) -> (i32, i32) {
    %c0_i32 = arith.constant 0 : i32
    %c0_i32_0 = arith.constant 0 : i32
    %c0_i32_1 = arith.constant 0 : i32
    return %c0_i32, %c0_i32_0 : i32, i32
  }
  func.func @transform_8(%arg0: i32, %arg1: i32) -> (i32, i32) {
    %c0_i32 = arith.constant 0 : i32
    %c0_i32_0 = arith.constant 0 : i32
    %c0_i32_1 = arith.constant 0 : i32
    return %c0_i32, %c0_i32_0 : i32, i32
  }
  func.func @transform_9(%arg0: i32, %arg1: i32) -> (i32, i32) {
    %c0_i32 = arith.constant 0 : i32
    %c0_i32_0 = arith.constant 0 : i32
    %c0_i32_1 = arith.constant 0 : i32
    return %c0_i32, %c0_i32_0 : i32, i32
  }
  func.func @transform_10(%arg0: i32, %arg1: i32) -> (i32, i32) {
    %c0_i32 = arith.constant 0 : i32
    %c0_i32_0 = arith.constant 0 : i32
    return %c0_i32, %arg0 : i32, i32
  }
}

</mosaic_0001>

<bundles_post_ra>
// kernel: tpu_custom_call.1
= control target key start
LH: loop header
LB: loop body
LE: loop exit
PB: predicated region body
PF: predicated region fallthrough
CT: control target
= control target key end

     0   :  { %v2861_v8 = vmov 0.0   ;;  %v2862_v9 = vmov 0   ;;  %vm172_vm0 = vcmask 261120   ;;  %s3456_s0 = inlined_call_operand.vmem [shape: f32[1,1,1,32,256], index: 0, kind: input, shape index: {}]   ;;  %s3457_s1 = inlined_call_operand.vmem [shape: f32[128,32], index: 1, kind: input, shape index: {}]   ;;  %s3458_s2 = inlined_call_operand.vmem [shape: f32[128,1], index: 2, kind: input, shape index: {}]   ;;  %s3459_s3 = inlined_call_operand.vmem [shape: f32[8,32], index: 3, kind: input, shape index: {}]   ;;  %s3460_s4 = inlined_call_operand.vmem [shape: f32[8,8], index: 4, kind: input, shape index: {}]   ;;  %s3461_s5 = inlined_call_operand.vmem [shape: f32[16,16], index: 5, kind: input, shape index: {}]   ;;  %s3462_s6 = inlined_call_operand.vmem [shape: f32[64,16], index: 6, kind: input, shape index: {}]   ;;  %s3463_s7 = inlined_call_operand.vmem [shape: f32[64,1], index: 7, kind: input, shape index: {}]   ;;  %s3464_s8 = inlined_call_operand.vmem [shape: f32[2,64], index: 8, kind: input, shape index: {}]   ;;  %s3465_s9 = inlined_call_operand.vmem [shape: f32[2,1], index: 9, kind: input, shape index: {}]   ;;  %s3466_s10 = inlined_call_operand.hbm [shape: f32[2,256], index: 10, kind: output, shape index: {}]  }
   0x1   :  { %v85_v0 = vld [vmem:[%s3456_s0 + $0x8] sm:$0xff]  ;;  %v87_v1 = vld [vmem:[%s3456_s0 + $0x18] sm:$0xff]  ;;  %v84_v2 = vld [vmem:[%s3456_s0] sm:$0xff]  ;;  %369 = vmatprep.mubr.f32.mxu1 %v2861_v8  ;;  %2731 = vset.pattern.permute.xlu0 %v2862_v9 }
   0x2   :  { %v2626_v3 = vpack.c.bf16 %v87_v1, %v85_v0  ;;  %v422_v4 = vand.u32 2147483647, %v85_v0  ;;  %v424_v5 = vand.u32 2147483647, %v87_v1  ;;  %v86_v6 = vld [vmem:[%s3456_s0 + $0x10] sm:$0xff]  ;;  %v89_v7 = vld [vmem:[%s3456_s0 + $0x28] sm:$0xff]  ;;  %2732 = vset.pattern.permute.xlu1 %v2862_v9  ;;  %285 = vmatprep.mubr.f32.mxu0 %v2861_v8 }
   0x3   :  { %v2628_v10 = vpack.c.bf16 %v86_v6, %v84_v2  ;;  %v91_v11 = vld [vmem:[%s3456_s0 + $0x38] sm:$0xff]  ;;  %v88_v12 = vld [vmem:[%s3456_s0 + $0x20] sm:$0xff]  ;;  %v90_v14 = vld [vmem:[%s3456_s0 + $0x30] sm:$0xff]  ;;  %v421_v15 = vand.u32 2147483647, %v84_v2 }
   0x4   :  { %2722 = vmatprep.subr.bf16.mxu1 %v2626_v3  ;;  %v2630_v13 = vpack.c.bf16 %v91_v11, %v89_v7  ;;  %2627 = vmatprep.subr.bf16.mxu0 %v2626_v3  ;;  %v423_v16 = vand.u32 2147483647, %v86_v6  ;;  %v2632_v17 = vpack.c.bf16 %v90_v14, %v88_v12  ;;  %v65_v18 = vld [vmem:[%s3458_s2] sm:$0xff]  ;;  %v2634_v19 = vpack.c.bf16 %v424_v5, %v422_v4  ;;  %v67_v22 = vld [vmem:[%s3458_s2 + $0x10] sm:$0xff]  ;;  %v66_v23 = vld [vmem:[%s3458_s2 + $0x8] sm:$0xff] }
   0x5   :  { %2724 = vmatpush1.bf16.msra.mxu1 %v2628_v10  ;;  %2629 = vmatpush1.bf16.msra.mxu0 %v2628_v10  ;;  %v426_v20 = vand.u32 2147483647, %v89_v7  ;;  %v428_v21 = vand.u32 2147483647, %v91_v11  ;;  %v68_v24 = vld [vmem:[%s3458_s2 + $0x18] sm:$0xff]  ;;  %v63_v28 = vld [vmem:[%s3457_s1 + $0x70] sm:$0xff] }
   0x6   :  { %2723 = vmatprep.subr.bf16.mxu1 %v2630_v13  ;;  %94 = vperm.xlu0 %2731, %v65_v18   ;;  %v2636_v25 = vpack.c.bf16 %v423_v16, %v421_v15  ;;  %v425_v26 = vand.u32 2147483647, %v88_v12  ;;  %v427_v27 = vand.u32 2147483647, %v90_v14  ;;  %v69_v30 = vld [vmem:[%s3458_s2 + $0x20] sm:$0xff]  ;;  %v70_v32 = vld [vmem:[%s3458_s2 + $0x28] sm:$0xff] }
   0x7   :  { %104 = vperm.xlu1 %2732, %v67_v22   ;;  %2631 = vmatprep.subr.bf16.mxu0 %v2630_v13  ;;  %v2638_v29 = vpack.c.bf16 %v428_v21, %v426_v20  ;;  %v49_v31 = vld [vmem:[%s3457_s1] sm:$0xff] }
   0x9   :  { %2725 = vmatpush1.bf16.msra.mxu1 %v2632_v17  ;;  %2633 = vmatpush1.bf16.msra.mxu0 %v2632_v17 }
   0xa   :  { %2635 = vmatprep.subr.bf16.mxu1 %v2634_v19  ;;  %99 = vperm.xlu0 %2731, %v66_v23  }
   0xb   :  { %109 = vperm.xlu1 %2732, %v68_v24  }
   0xc   :  { %2402 = vmatmul.mubr.msk.f32.vlgmr.msra.gmra.mrb[0].mxu1 %vm172_vm0, %v63_v28  ;;  %2388 = vmatmul.mubr.msk.f32.vlgmr.msra.gmra.mrb[0].mxu0 %vm172_vm0, %v49_v31 }
   0xd   :  { %15 = vsyncpa [#allocation7], 0  ;;  %2637 = vmatpush1.bf16.msra.mxu1 %v2636_v25  ;;  %375 = vmatprep.mubr.f32.mxu1 %v2861_v8  ;;  %v64_v33 = vld [vmem:[%s3457_s1 + $0x78] sm:$0xff]  ;;  %v2640_v34 = vpack.c.bf16 %v427_v27, %v425_v26  ;;  %v50_v35 = vld [vmem:[%s3457_s1 + $0x8] sm:$0xff]  ;;  %v44_v58 = vlaneseq  ;;  %v2863_v60 = vmov 1.0   ;;  %vm509_vm3 = vcmask 64512  }
   0xe   :  { %2639 = vmatprep.subr.bf16.mxu1 %v2638_v29  ;;  %114 = vperm.xlu0 %2731, %v69_v30   ;;  %v71_v36 = vld [vmem:[%s3458_s2 + $0x30] sm:$0xff]  ;;  %v72_v37 = vld [vmem:[%s3458_s2 + $0x38] sm:$0xff]  ;;  %v81_v38 = vld [vmem:[%s3459_s3] sm:$0xff]  ;;  %vm638_vm5 = vcmask 130048  }
   0xf   :  { %119 = vperm.xlu1 %2732, %v70_v32   ;;  %291 = vmatprep.mubr.f32.mxu0 %v2861_v8  ;;  %v51_v39 = vld [vmem:[%s3457_s1 + $0x10] sm:$0xff]  ;;  %v73_v40 = vld [vmem:[%s3458_s2 + $0x40] sm:$0xff]  ;;  %v74_v41 = vld [vmem:[%s3458_s2 + $0x48] sm:$0xff]  ;;  %vm3077_vm1 = vcmp.lt.s32.totalorder %v44_v58, 256 }
  0x10   :  { %2403 = vmatmul.mubr.msk.f32.gmra.mrb[2].mxu1 %vm172_vm0, %v64_v33  ;;  %2389 = vmatmul.mubr.msk.f32.gmra.mrb[2].mxu0 %vm172_vm0, %v50_v35  ;;  %v52_v42 = vld [vmem:[%s3457_s1 + $0x18] sm:$0xff]  ;;  %v75_v43 = vld [vmem:[%s3458_s2 + $0x50] sm:$0xff]  ;;  %v53_v45 = vld [vmem:[%s3457_s1 + $0x20] sm:$0xff]  ;;  %48 = vst.msk [vmem:[#allocation3] sm:$0x3] %vm3077_vm1, %v2863_v60 }
  0x11   :  { %2641 = vmatpush1.bf16.msra.mxu1 %v2640_v34  ;;  %496 = vmatprep.mubr.f32.mxu1 %v2861_v8  ;;  %v76_v44 = vld [vmem:[%s3458_s2 + $0x58] sm:$0xff]  ;;  %v77_v46 = vld [vmem:[%s3458_s2 + $0x60] sm:$0xff]  ;;  %v78_v47 = vld [vmem:[%s3458_s2 + $0x68] sm:$0xff] }
  0x12   :  { %124 = vperm.xlu0 %2731, %v71_v36   ;;  %297 = vmatprep.mubr.f32.mxu0 %v2861_v8  ;;  %v54_v48 = vld [vmem:[%s3457_s1 + $0x28] sm:$0xff]  ;;  %v79_v49 = vld [vmem:[%s3458_s2 + $0x70] sm:$0xff]  ;;  %v80_v50 = vld [vmem:[%s3458_s2 + $0x78] sm:$0xff] }
  0x13   :  { %129 = vperm.xlu1 %2732, %v72_v37   ;;  %v55_v51 = vld [vmem:[%s3457_s1 + $0x30] sm:$0xff]  ;;  %v56_v52 = vld [vmem:[%s3457_s1 + $0x38] sm:$0xff]  ;;  %v57_v53 = vld [vmem:[%s3457_s1 + $0x40] sm:$0xff] }
  0x14   :  { %2404 = vmatmul.mubr.msk.f32.vlgmr.msra.gmra.mrb[4].mxu1 %vm172_vm0, %v81_v38  ;;  %2390 = vmatmul.mubr.msk.f32.gmra.mrb[4].mxu0 %vm172_vm0, %v51_v39  ;;  %v58_v54 = vld [vmem:[%s3457_s1 + $0x48] sm:$0xff]  ;;  %v59_v55 = vld [vmem:[%s3457_s1 + $0x50] sm:$0xff]  ;;  %v60_v56 = vld [vmem:[%s3457_s1 + $0x58] sm:$0xff] }
  0x15   :  { %303 = vmatprep.mubr.f32.mxu0 %v2861_v8  ;;  %577 = vmatprep.mubr.f32.mxu1 %v2861_v8  ;;  %v61_v57 = vld [vmem:[%s3457_s1 + $0x60] sm:$0xff]  ;;  %v2042_v62 = vld [vmem:[%s3463_s7 + $0x10] sm:$0xff]  ;;  %v3138_v20 = vld [vmem:[%s3461_s5 + $0x8] sm:$0xff] }
  0x16   :  { %134 = vperm.xlu0 %2731, %v73_v40   ;;  %v2040_v61 = vld [vmem:[%s3463_s7] sm:$0xff]  ;;  %v2046_v0 = vld [vmem:[%s3463_s7 + $0x30] sm:$0xff]  ;;  %v62_v39 = vld [vmem:[%s3457_s1 + $0x68] sm:$0xff] }
  0x17   :  { %139 = vperm.xlu1 %2732, %v74_v41   ;;  %v2044_v63 = vld [vmem:[%s3463_s7 + $0x20] sm:$0xff]  ;;  %v2041_v40 = vld [vmem:[%s3463_s7 + $0x8] sm:$0xff]  ;;  %v2043_v41 = vld [vmem:[%s3463_s7 + $0x18] sm:$0xff] }
  0x18   :  { %2391 = vmatmul.mubr.msk.f32.gmra.mrb[6].mxu0 %vm172_vm0, %v52_v42  ;;  %v2242_v1 = vld [vmem:[%s3465_s9] sm:$0x3]  ;;  %v2045_v42 = vld [vmem:[%s3463_s7 + $0x28] sm:$0xff] }
  0x19   :  { %309 = vmatprep.mubr.f32.mxu0 %v2861_v8  ;;  %v82_v16 = vld [vmem:[%s3460_s4] sm:$0xff] }
  0x1a   :  { %144 = vperm.xlu0 %2731, %v75_v43   ;;  %v3125_v17 = vld [vmem:[%s3461_s5] sm:$0xff]  ;;  %v2047_v43 = vld [vmem:[%s3463_s7 + $0x38] sm:$0xff] }
  0x1b   :  { %149 = vperm.xlu1 %2732, %v76_v44   ;;  %v3205_v44 = vshrl.u32 %v44_v58, 7 }
  0x1c   :  { %2392 = vmatmul.mubr.msk.f32.gmra.mrb[8].mxu0 %vm172_vm0, %v53_v45 }
  0x1d   :  { %315 = vmatprep.mubr.f32.mxu0 %v2861_v8  ;;  %v3208_v45 = vsub.s32 0, %v3205_v44 }
  0x1e   :  { %154 = vperm.xlu0 %2731, %v77_v46   ;;  %v2864_v46 = vmov 1966171168  }
  0x1f   :  { %159 = vperm.xlu1 %2732, %v78_v47   ;;  %v605_v47 = vunpack.c.l.s4 %v2864_v46 }
  0x20   :  { %2393 = vmatmul.mubr.msk.f32.gmra.mrb[10].mxu0 %vm172_vm0, %v54_v48  ;;  %v83_v48 = vld [vmem:[#allocation3] sm:$0x3] }
  0x21   :  { %321 = vmatprep.mubr.f32.mxu0 %v2861_v8 }
  0x22   :  { %164 = vperm.xlu0 %2731, %v79_v49   ;;  %v3211_v49 = vsub.s32 1, %v3205_v44 }
  0x23   :  { %169 = vperm.xlu1 %2732, %v80_v50  }
  0x24   :  { %2394 = vmatmul.mubr.msk.f32.gmra.mrb[12].mxu0 %vm172_vm0, %v55_v51  ;;  %v590_v51 = vrot.slane %v83_v48, %v3208_v45 }
  0x25   :  { %327 = vmatprep.mubr.f32.mxu0 %v2861_v8 }
  0x26   :  { %2050 = vperm.xlu0 %2731, %v2040_v61  }
  0x27   :  { %2055 = vperm.xlu1 %2732, %v2041_v40   ;;  %v1244_v40 = vsub.s32 3, %v3205_v44 }
  0x28   :  { %2395 = vmatmul.mubr.msk.f32.gmra.mrb[14].mxu0 %vm172_vm0, %v56_v52  ;;  %v606_v52 = vunpack.c.0.s8 %v605_v47 }
  0x29   :  { %333 = vmatprep.mubr.f32.mxu0 %v2861_v8 }
  0x2a   :  { %2060 = vperm.xlu0 %2731, %v2042_v62   ;;  %v609_v58 = vsub.s32 %v606_v52, %v3205_v44  ;;  %v1072_v62 = vsub.s32 2, %v3205_v44  ;;  %v1588_v52 = vsub.s32 5, %v3205_v44 }
  0x2b   :  { %2065 = vperm.xlu1 %2732, %v2043_v41  }
  0x2c   :  { %2396 = vmatmul.mubr.msk.f32.gmra.mrb[16].mxu0 %vm172_vm0, %v57_v53  ;;  %v594_v53 = vrot.slane %v83_v48, %v3211_v49 }
  0x2d   :  { %339 = vmatprep.mubr.f32.mxu0 %v2861_v8 }
  0x2e   :  { %2070 = vperm.xlu0 %2731, %v2044_v63  }
  0x2f   :  { %2075 = vperm.xlu1 %2732, %v2045_v42  }
  0x30   :  { %2397 = vmatmul.mubr.msk.f32.gmra.mrb[18].mxu0 %vm172_vm0, %v58_v54 }
  0x31   :  { %345 = vmatprep.mubr.f32.mxu0 %v2861_v8 }
  0x32   :  { %2080 = vperm.xlu0 %2731, %v2046_v0  }
  0x33   :  { %2085 = vperm.xlu1 %2732, %v2047_v43   ;;  %v1416_v43 = vsub.s32 4, %v3205_v44 }
  0x34   :  { %2398 = vmatmul.mubr.msk.f32.gmra.mrb[20].mxu0 %vm172_vm0, %v59_v55 }
  0x35   :  { %351 = vmatprep.mubr.f32.mxu0 %v2861_v8 }
  0x36   :  { %2245 = vperm.xlu0 %2731, %v2242_v1  }
  0x38   :  { %2399 = vmatmul.mubr.msk.f32.gmra.mrb[22].mxu0 %vm172_vm0, %v60_v56 }
  0x39   :  { %357 = vmatprep.mubr.f32.mxu0 %v2861_v8 }
  0x3c   :  { %2400 = vmatmul.mubr.msk.f32.gmra.mrb[24].mxu0 %vm172_vm0, %v61_v57 }
  0x3d   :  { %363 = vmatprep.mubr.f32.mxu0 %v2861_v8 }
  0x40   :  { %2401 = vmatmul.mubr.msk.f32.gmra.mrb[26].mxu0 %vm172_vm0, %v62_v39 }
  0x41   :  { %2616 = vmatprep.mubr.msk.f32.mxu0 %vm638_vm5, %v3125_v17 }
  0x85   :  { %v95_v50 = vpop.permute.xlu0 %94 }
  0x89   :  { %v100_v56 = vpop.permute.xlu0 %99 }
  0xdf   :  { %v3099_v2 = vpop.f32.mrb[0].mxu1  ;;  %v3101_v3 = vpop.f32.mrb[0].mxu0 }
  0xe0   :  { %v3103_v4 = vpop.f32.mrb[1].mxu1  ;;  %v3105_v5 = vpop.f32.mrb[1].mxu0  ;;  %v288_v63 = vadd.f32 %v3101_v3, %v95_v50 }
  0xe1   :  { %v290_v46 = vadd.f32 %v3105_v5, %v95_v50 }
  0xe3   :  { %v3107_v6 = vpop.f32.mrb[2].mxu1  ;;  %v3109_v7 = vpop.f32.mrb[2].mxu0 }
  0xe4   :  { %v3111_v10 = vpop.f32.mrb[3].mxu1  ;;  %v3113_v11 = vpop.f32.mrb[3].mxu0 }
  0xe5   :  { %v296_v47 = vadd.f32 %v3113_v11, %v100_v56  ;;  %v1932_v11 = vsub.s32 7, %v3205_v44 }
  0xe7   :  { %v498_v12 = vpop.f32.mrb[4].mxu1  ;;  %v3115_v13 = vpop.f32.mrb[4].mxu0 }
  0xe8   :  { %v500_v14 = vpop.f32.mrb[5].mxu1  ;;  %v3117_v15 = vpop.f32.mrb[5].mxu0  ;;  %vm503_vm4 = vcmp.eq.f32.partialorder %v498_v12, 0.0 }
  0xe9   :  { %vm504_vm2 = vcmp.eq.f32.partialorder %v500_v14, 0.0 }
  0xea   :  { %2407 = vmatprep.subr.msk.mxu1 %vm504_vm2, %v2863_v60 }
  0xeb   :  { %2408 = vmatpush1.msk.msra.mxu1 %vm503_vm4, %v2863_v60  ;;  %v3127_v18 = vpop.f32.mrb[6].mxu0  ;;  %v294_v60 = vadd.f32 %v3109_v7, %v100_v56 }
  0xec   :  { %2409 = vmatmul.mubr.msk.f32.vlgmr.msra.gmra.mrb[6].mxu1 %vm509_vm3, %v82_v16  ;;  %2518 = vmatprep.subr.mxu1 %v2861_v8  ;;  %v3130_v19 = vpop.f32.mrb[7].mxu0 }
  0xed   :  { %2519 = vmatpush3.msra.mxu1 %v2861_v8  ;;  %2520 = vmatprep.mubr.msk.f32.mxu1 %vm638_vm5, %v3125_v17 }
  0xee   :  { %2523 = vmatprep.subr.mxu1 %v2861_v8 }
  0xef   :  { %v3141_v21 = vpop.f32.mrb[8].mxu0 }
  0xf0   :  { %2521 = vmatmul.mubr.msk.f32.vlgmr.msra.gmra.mrb[8].mxu1 %vm638_vm5, %v3138_v20  ;;  %v3145_v22 = vpop.f32.mrb[9].mxu0 }
  0xf1   :  { %2524 = vmatpush3.msra.mxu1 %v2861_v8  ;;  %2525 = vmatprep.mubr.msk.f32.mxu1 %vm638_vm5, %v3125_v17 }
  0xf3   :  { %v3150_v23 = vpop.f32.mrb[10].mxu0 }
  0xf4   :  { %2526 = vmatmul.mubr.msk.f32.vlgmr.msra.gmra.mrb[10].mxu1 %vm638_vm5, %v3138_v20  ;;  %v3154_v24 = vpop.f32.mrb[11].mxu0 }
  0xf5   :  { %2532 = vmatprep.mubr.msk.f32.mxu1 %vm638_vm5, %v3125_v17 }
  0xf7   :  { %v3158_v25 = vpop.f32.mrb[12].mxu0 }
  0xf8   :  { %v3160_v26 = vpop.f32.mrb[13].mxu0 }
  0xfb   :  { %v3162_v27 = vpop.f32.mrb[14].mxu0 }
  0xfc   :  { %v3164_v28 = vpop.f32.mrb[15].mxu0 }
  0xff   :  { %v3166_v29 = vpop.f32.mrb[16].mxu0 }
 0x100   :  { %v3168_v30 = vpop.f32.mrb[17].mxu0 }
 0x103   :  { %v3170_v31 = vpop.f32.mrb[18].mxu0 }
 0x104   :  { %v3172_v32 = vpop.f32.mrb[19].mxu0 }
 0x107   :  { %v3174_v33 = vpop.f32.mrb[20].mxu0 }
 0x108   :  { %v3176_v34 = vpop.f32.mrb[21].mxu0 }
 0x10b   :  { %v3178_v35 = vpop.f32.mrb[22].mxu0 }
 0x10c   :  { %v3180_v36 = vpop.f32.mrb[23].mxu0 }
 0x10f   :  { %v3182_v37 = vpop.f32.mrb[24].mxu0 }
 0x110   :  { %v3184_v38 = vpop.f32.mrb[25].mxu0 }
 0x1bf   :  { %v579_v54 = vpop.f32.mrb[6].mxu1 }
 0x1c0   :  { %vm584_vm6 = vcmp.gt.f32.partialorder %v579_v54, 0.5  ;;  %v581_v55 = vpop.f32.mrb[7].mxu1 }
 0x1c1   :  { %v597_v57 = vsel %vm584_vm6, 0.0, %v590_v51  ;;  %vm585_vm7 = vcmp.gt.f32.partialorder %v581_v55, 0.5 }
 0x1c2   :  { %vm722_vm8 = vcmp.gt.f32.partialorder %v597_v57, 0.0  ;;  %v598_v61 = vsel %vm585_vm7, 0.0, %v594_v53  ;;  %v1760_v53 = vsub.s32 6, %v3205_v44 }
 0x1c3   :  { %v3220_v0 = vsel %vm722_vm8, 1, %v2862_v9  ;;  %v603_v1 = vcombine.high %v597_v57, %v598_v61  ;;  %vm808_vm9 = vcmp.gt.f32.partialorder %v598_v61, 0.0  ;;  %v2522_v12 = vpop.f32.mrb[8].mxu1 }
 0x1c4   :  { %v3223_v14 = vsel %vm808_vm9, 1, %v2862_v9  ;;  %v717_v16 = vadd.f32 %v2522_v12, %v294_v60  ;;  %v711_v39 = vpop.f32.mrb[9].mxu1  ;;  %v727_v7 = vrot.slane %v3220_v0, %v3208_v45  ;;  %v3234_v9 = vrot.slane %v3220_v0, %v1072_v62 }
 0x1c5   :  { %v610_v41 = vrot.slane %v603_v1, %v609_v58  ;;  %v712_v42 = vadd.f32 %v711_v39, %v288_v63  ;;  %v813_v3 = vrot.slane %v3223_v14, %v3208_v45  ;;  %v3239_v45 = vrot.slane %v3223_v14, %v1072_v62 }
 0x1c6   :  { %2733 = vtanh.f32 %v717_v16  ;;  %v3242_v5 = vrot.slane %v3220_v0, %v1244_v40  ;;  %v3246_v57 = vrot.slane %v3223_v14, %v1244_v40  ;;  %v3249_v60 = vrot.slane %v3220_v0, %v1416_v43 }
 0x1c7   :  { %v611_v48 = vcombine.high %v610_v41, %v610_v41  ;;  %2735 = vtanh.f32 %v712_v42  ;;  %v2527_v51 = vpop.f32.mrb[10].mxu1  ;;  %v3252_v61 = vrot.slane %v3223_v14, %v1416_v43  ;;  %v3255_v62 = vrot.slane %v3220_v0, %v1588_v52 }
 0x1c8   :  { %v803_v54 = vadd.f32 %v2527_v51, %v296_v47  ;;  %v797_v55 = vpop.f32.mrb[11].mxu1  ;;  %v3258_v1 = vrot.slane %v3223_v14, %v1588_v52  ;;  %v3261_v44 = vrot.slane %v3220_v0, %v1760_v53  ;;  %v3269_v12 = vrot.slane %v3223_v14, %v1932_v11 }
 0x1c9   :  { %v618_v50 = vrot.slane %v611_v48, %v609_v58  ;;  %v798_v56 = vadd.f32 %v797_v55, %v290_v46  ;;  %v3266_v58 = vrot.slane %v3223_v14, %v1760_v53  ;;  %v3272_v16 = vrot.slane %v3220_v0, %v1932_v11 }
 0x1ca   :  { %2737 = vtanh.f32 %v803_v54  ;;  %vm3274_vm10 = vcmp.eq.s32.totalorder %v727_v7, 1  ;;  %vm3285_vm12 = vcmp.eq.s32.totalorder %v813_v3, 1  ;;  %v3304_v3 = vpop.f32.mrb[26].mxu0  ;;  %v105_v54 = vpop.permute.xlu1 %104  ;;  %vm1074_vm0 = vcmp.eq.s32.totalorder %v3234_v9, 1 }
 0x1cb   :  { %v619_v63 = vcombine.high %v618_v50, %v618_v50  ;;  %2739 = vtanh.f32 %v798_v56  ;;  %vm2643_vm11 = vmpackc.low %vm3274_vm10, %vm3274_vm10  ;;  %v3306_v53 = vpop.f32.mrb[27].mxu0  ;;  %v300_v50 = vadd.f32 %v3115_v13, %v105_v54  ;;  %vm1246_vm2 = vcmp.eq.s32.totalorder %v3242_v5, 1 }
 0x1cc   :  { %vm2649_vm13 = vmpackc.low %vm3285_vm12, %vm3285_vm12  ;;  %vm1330_vm3 = vcmp.eq.s32.totalorder %v3246_v57, 1  ;;  %vm1418_vm4 = vcmp.eq.s32.totalorder %v3249_v60, 1  ;;  %vm1502_vm6 = vcmp.eq.s32.totalorder %v3252_v61, 1  ;;  %vm1590_vm7 = vcmp.eq.s32.totalorder %v3255_v62, 1 }
 0x1cd   :  { %625 = vst.msk [vmem:[#allocation3] sm:$0x3] %vm3077_vm1, %v619_v63  ;;  %vm1158_vm1 = vcmp.eq.s32.totalorder %v3239_v45, 1  ;;  %vm1674_vm8 = vcmp.eq.s32.totalorder %v3258_v1, 1  ;;  %vm1762_vm9 = vcmp.eq.s32.totalorder %v3261_v44, 1 }
 0x1ce   :  { %v110_v55 = vpop.permute.xlu1 %109 }
 0x1cf   :  { %v306_v11 = vadd.f32 %v3127_v18, %v110_v55  ;;  %v901_v18 = vrot.slane %v3220_v0, %v3211_v49  ;;  %v115_v0 = vpop.permute.xlu0 %114 }
 0x1d0   :  { %v2734_v39 = vpop.eup %2733 }
 0x1d1   :  { %v2736_v41 = vpop.eup %2735  ;;  %v730_v42 = vsel %vm3274_vm10, %v2734_v39, 0.0  ;;  %vm902_vm14 = vcmp.eq.s32.totalorder %v901_v18, 1 }
 0x1d2   :  { %v2642_v59 = vpack.c.bf16 %v2734_v39, %v2736_v41  ;;  %v729_v43 = vsel %vm3274_vm10, %v2736_v41, 0.0  ;;  %v308_v41 = vadd.f32 %v3130_v19, %v110_v55  ;;  %vm1846_vm10 = vcmp.eq.s32.totalorder %v3266_v58, 1 }
 0x1d3   :  { %v125_v45 = vpop.permute.xlu0 %124 }
 0x1d4   :  { %v2738_v46 = vpop.eup %2737  ;;  %2644 = vmatprep.subr.msk.bf16.mxu1 %vm2643_vm11, %v2642_v59 }
 0x1d5   :  { %v2740_v7 = vpop.eup %2739  ;;  %2647 = vmatpush3.bf16.msk.msra.mxu1 %vm2643_vm11, %v2642_v59  ;;  %v816_v48 = vsel %vm3285_vm12, %v2738_v46, 0.0  ;;  %v302_v59 = vadd.f32 %v3117_v15, %v105_v54  ;;  %vm1934_vm11 = vcmp.eq.s32.totalorder %v3272_v16, 1  ;;  %v2033_v16 = vld [vmem:[%s3462_s6 + $0x8] sm:$0xff] }
 0x1d6   :  { %v2648_v51 = vpack.c.bf16 %v2738_v46, %v2740_v7  ;;  %v815_v52 = vsel %vm3285_vm12, %v2740_v7, 0.0  ;;  %vm2018_vm12 = vcmp.eq.s32.totalorder %v3269_v12, 1  ;;  %v2034_v12 = vld [vmem:[%s3462_s6 + $0x10] sm:$0xff] }
 0x1d7   :  { %v135_v57 = vpop.permute.xlu0 %134 }
 0x1d8   :  { %2533 = vmatmul.mubr.msk.f32.vlgmr.msra.gmra.mrb[12].mxu1 %vm638_vm5, %v3138_v20  ;;  %2650 = vmatprep.subr.msk.bf16.mxu1 %vm2649_vm13, %v2648_v51 }
 0x1d9   :  { %2653 = vmatpush3.bf16.msk.msra.mxu1 %vm2649_vm13, %v2648_v51  ;;  %2539 = vmatprep.mubr.msk.f32.mxu1 %vm638_vm5, %v3125_v17  ;;  %vm2323_vm13 = vcmask 1041408  }
 0x1db   :  { %v145_v61 = vpop.permute.xlu0 %144 }
 0x1dc   :  { %2540 = vmatmul.mubr.msk.f32.vlgmr.msra.gmra.mrb[14].mxu1 %vm638_vm5, %v3138_v20 }
 0x1dd   :  { %2546 = vmatprep.mubr.msk.f32.mxu1 %vm638_vm5, %v3125_v17 }
 0x1df   :  { %v155_v1 = vpop.permute.xlu0 %154 }
 0x1e3   :  { %v165_v58 = vpop.permute.xlu0 %164 }
 0x2ab   :  { %v2534_v56 = vpop.f32.mrb[12].mxu1 }
 0x2ac   :  { %v893_v63 = vadd.f32 %v2534_v56, %v306_v11  ;;  %v887_v39 = vpop.f32.mrb[13].mxu1  ;;  %v985_v11 = vrot.slane %v3223_v14, %v3211_v49  ;;  %v120_v49 = vpop.permute.xlu1 %119 }
 0x2ad   :  { %v888_v40 = vadd.f32 %v887_v39, %v300_v50  ;;  %v318_v14 = vadd.f32 %v3150_v23, %v120_v49 }
 0x2ae   :  { %2741 = vtanh.f32 %v893_v63  ;;  %vm986_vm15 = vcmp.eq.s32.totalorder %v985_v11, 1 }
 0x2af   :  { %2743 = vtanh.f32 %v888_v40  ;;  %v2541_v46 = vpop.f32.mrb[14].mxu1 }
 0x2b0   :  { %v977_v47 = vadd.f32 %v2541_v46, %v308_v41  ;;  %v971_v7 = vpop.f32.mrb[15].mxu1  ;;  %v314_v46 = vadd.f32 %v3145_v22, %v115_v0  ;;  %v130_v9 = vpop.permute.xlu1 %129 }
 0x2b1   :  { %v972_v51 = vadd.f32 %v971_v7, %v302_v59  ;;  %v320_v59 = vadd.f32 %v3154_v24, %v120_v49 }
 0x2b2   :  { %2745 = vtanh.f32 %v977_v47 }
 0x2b3   :  { %2747 = vtanh.f32 %v972_v51 }
 0x2b4   :  { %v140_v5 = vpop.permute.xlu1 %139 }
 0x2b8   :  { %v2742_v13 = vpop.eup %2741  ;;  %v150_v60 = vpop.permute.xlu1 %149 }
 0x2b9   :  { %v2744_v50 = vpop.eup %2743  ;;  %v904_v19 = vsel %vm902_vm14, %v2742_v13, %v730_v42  ;;  %v312_v42 = vadd.f32 %v3141_v21, %v115_v0  ;;  %v332_v0 = vadd.f32 %v3164_v28, %v130_v9 }
 0x2ba   :  { %v903_v55 = vsel %vm902_vm14, %v2744_v50, %v729_v43 }
 0x2bb   :  { %v2654_v56 = vpack.c.bf16 %v904_v19, %v903_v55 }
 0x2bc   :  { %v2746_v15 = vpop.eup %2745  ;;  %v160_v62 = vpop.permute.xlu1 %159 }
 0x2bd   :  { %v2748_v54 = vpop.eup %2747  ;;  %2655 = vmatprep.subr.bf16.mxu1 %v2654_v56  ;;  %v988_v63 = vsel %vm986_vm15, %v2746_v15, %v816_v48 }
 0x2be   :  { %2657 = vmatpush3.bf16.msra.mxu1 %v2654_v56  ;;  %v987_v39 = vsel %vm986_vm15, %v2748_v54, %v815_v52 }
 0x2bf   :  { %v2658_v40 = vpack.c.bf16 %v988_v63, %v987_v39 }
 0x2c0   :  { %v170_v44 = vpop.permute.xlu1 %169 }
 0x2c1   :  { %2547 = vmatmul.mubr.msk.f32.vlgmr.msra.gmra.mrb[16].mxu1 %vm638_vm5, %v3138_v20  ;;  %2659 = vmatprep.subr.bf16.mxu1 %v2658_v40 }
 0x2c2   :  { %2661 = vmatpush3.bf16.msra.mxu1 %v2658_v40  ;;  %2553 = vmatprep.mubr.msk.f32.mxu1 %vm638_vm5, %v3125_v17 }
 0x2c5   :  { %2554 = vmatmul.mubr.msk.f32.vlgmr.msra.gmra.mrb[18].mxu1 %vm638_vm5, %v3138_v20 }
 0x2c6   :  { %2560 = vmatprep.mubr.msk.f32.mxu1 %vm638_vm5, %v3125_v17 }
 0x394   :  { %v2548_v43 = vpop.f32.mrb[16].mxu1 }
 0x395   :  { %v1065_v48 = vadd.f32 %v2548_v43, %v318_v14  ;;  %v1059_v52 = vpop.f32.mrb[17].mxu1  ;;  %v326_v14 = vadd.f32 %v3160_v26, %v125_v45 }
 0x396   :  { %v1060_v41 = vadd.f32 %v1059_v52, %v312_v42 }
 0x397   :  { %2749 = vtanh.f32 %v1065_v48 }
 0x398   :  { %2751 = vtanh.f32 %v1060_v41  ;;  %v2555_v47 = vpop.f32.mrb[18].mxu1 }
 0x399   :  { %v1149_v7 = vadd.f32 %v2555_v47, %v320_v59  ;;  %v1143_v51 = vpop.f32.mrb[19].mxu1 }
 0x39a   :  { %v1144_v18 = vadd.f32 %v1143_v51, %v314_v46 }
 0x39b   :  { %2753 = vtanh.f32 %v1149_v7 }
 0x39c   :  { %2755 = vtanh.f32 %v1144_v18  ;;  %v342_v18 = vadd.f32 %v3170_v31, %v140_v5 }
 0x3a1   :  { %v2750_v13 = vpop.eup %2749 }
 0x3a2   :  { %v2752_v21 = vpop.eup %2751  ;;  %v1076_v23 = vsel %vm1074_vm0, %v2750_v13, %v904_v19  ;;  %v330_v19 = vadd.f32 %v3162_v27, %v130_v9  ;;  %v336_v13 = vadd.f32 %v3166_v29, %v135_v57 }
 0x3a3   :  { %v1075_v11 = vsel %vm1074_vm0, %v2752_v21, %v903_v55  ;;  %v324_v55 = vadd.f32 %v3158_v25, %v125_v45 }
 0x3a4   :  { %v2662_v50 = vpack.c.bf16 %v1076_v23, %v1075_v11 }
 0x3a5   :  { %v2754_v56 = vpop.eup %2753 }
 0x3a6   :  { %v2756_v24 = vpop.eup %2755  ;;  %2663 = vmatprep.subr.bf16.mxu1 %v2662_v50  ;;  %v1160_v22 = vsel %vm1158_vm1, %v2754_v56, %v988_v63  ;;  %v344_v56 = vadd.f32 %v3172_v32, %v140_v5 }
 0x3a7   :  { %2665 = vmatpush3.bf16.msra.mxu1 %v2662_v50  ;;  %v1159_v15 = vsel %vm1158_vm1, %v2756_v24, %v987_v39  ;;  %v338_v24 = vadd.f32 %v3168_v30, %v135_v57  ;;  %v366_v57 = vadd.f32 %v3304_v3, %v160_v62 }
 0x3a8   :  { %v2666_v54 = vpack.c.bf16 %v1160_v22, %v1159_v15 }
 0x3aa   :  { %2561 = vmatmul.mubr.msk.f32.vlgmr.msra.gmra.mrb[20].mxu1 %vm638_vm5, %v3138_v20  ;;  %2667 = vmatprep.subr.bf16.mxu1 %v2666_v54 }
 0x3ab   :  { %2669 = vmatpush3.bf16.msra.mxu1 %v2666_v54  ;;  %2567 = vmatprep.mubr.msk.f32.mxu1 %vm638_vm5, %v3125_v17 }
 0x3ae   :  { %2568 = vmatmul.mubr.msk.f32.vlgmr.msra.gmra.mrb[22].mxu1 %vm638_vm5, %v3138_v20 }
 0x3af   :  { %2574 = vmatprep.mubr.msk.f32.mxu1 %vm638_vm5, %v3125_v17 }
 0x47d   :  { %v2562_v63 = vpop.f32.mrb[20].mxu1 }
 0x47e   :  { %v1237_v39 = vadd.f32 %v2562_v63, %v330_v19  ;;  %v1231_v40 = vpop.f32.mrb[21].mxu1 }
 0x47f   :  { %v1232_v49 = vadd.f32 %v1231_v40, %v324_v55 }
 0x480   :  { %2757 = vtanh.f32 %v1237_v39 }
 0x481   :  { %2759 = vtanh.f32 %v1232_v49  ;;  %v2569_v42 = vpop.f32.mrb[22].mxu1  ;;  %v354_v49 = vadd.f32 %v3178_v35, %v150_v60 }
 0x482   :  { %v1321_v43 = vadd.f32 %v2569_v42, %v332_v0  ;;  %v1315_v48 = vpop.f32.mrb[23].mxu1  ;;  %v348_v0 = vadd.f32 %v3174_v33, %v145_v61 }
 0x483   :  { %v1316_v52 = vadd.f32 %v1315_v48, %v326_v14 }
 0x484   :  { %2761 = vtanh.f32 %v1321_v43 }
 0x485   :  { %2763 = vtanh.f32 %v1316_v52  ;;  %v356_v52 = vadd.f32 %v3180_v36, %v150_v60  ;;  %v380_v60 = vadd.f32 %v3111_v10, %v170_v44 }
 0x48a   :  { %v2758_v41 = vpop.eup %2757 }
 0x48b   :  { %v2760_v25 = vpop.eup %2759  ;;  %v1248_v27 = vsel %vm1246_vm2, %v2758_v41, %v1076_v23  ;;  %v350_v41 = vadd.f32 %v3176_v34, %v145_v61  ;;  %v374_v61 = vadd.f32 %v3103_v4, %v165_v58 }
 0x48c   :  { %v1247_v59 = vsel %vm1246_vm2, %v2760_v25, %v1075_v11 }
 0x48d   :  { %v2670_v46 = vpack.c.bf16 %v1248_v27, %v1247_v59 }
 0x48e   :  { %v2762_v47 = vpop.eup %2761 }
 0x48f   :  { %v2764_v28 = vpop.eup %2763  ;;  %2671 = vmatprep.subr.bf16.mxu1 %v2670_v46  ;;  %v1332_v26 = vsel %vm1330_vm3, %v2762_v47, %v1160_v22 }
 0x490   :  { %2673 = vmatpush3.bf16.msra.mxu1 %v2670_v46  ;;  %v1331_v7 = vsel %vm1330_vm3, %v2764_v28, %v1159_v15 }
 0x491   :  { %v2674_v51 = vpack.c.bf16 %v1332_v26, %v1331_v7 }
 0x493   :  { %2575 = vmatmul.mubr.msk.f32.vlgmr.msra.gmra.mrb[24].mxu1 %vm638_vm5, %v3138_v20  ;;  %2675 = vmatprep.subr.bf16.mxu1 %v2674_v51 }
 0x494   :  { %2677 = vmatpush3.bf16.msra.mxu1 %v2674_v51  ;;  %2581 = vmatprep.mubr.msk.f32.mxu1 %vm638_vm5, %v3125_v17 }
 0x497   :  { %2582 = vmatmul.mubr.msk.f32.vlgmr.msra.gmra.mrb[26].mxu1 %vm638_vm5, %v3138_v20 }
 0x498   :  { %2588 = vmatprep.mubr.msk.f32.mxu1 %vm638_vm5, %v3125_v17 }
 0x566   :  { %v2576_v21 = vpop.f32.mrb[24].mxu1 }
 0x567   :  { %v1409_v23 = vadd.f32 %v2576_v21, %v342_v18  ;;  %v1403_v11 = vpop.f32.mrb[25].mxu1  ;;  %v360_v18 = vadd.f32 %v3182_v37, %v155_v1 }
 0x568   :  { %v1404_v50 = vadd.f32 %v1403_v11, %v336_v13 }
 0x569   :  { %2765 = vtanh.f32 %v1409_v23 }
 0x56a   :  { %2767 = vtanh.f32 %v1404_v50  ;;  %v2583_v22 = vpop.f32.mrb[26].mxu1  ;;  %v368_v50 = vadd.f32 %v3306_v53, %v160_v62 }
 0x56b   :  { %v1493_v15 = vadd.f32 %v2583_v22, %v344_v56  ;;  %v1487_v54 = vpop.f32.mrb[27].mxu1  ;;  %v362_v56 = vadd.f32 %v3184_v38, %v155_v1 }
 0x56c   :  { %v1488_v9 = vadd.f32 %v1487_v54, %v338_v24 }
 0x56d   :  { %2769 = vtanh.f32 %v1493_v15 }
 0x56e   :  { %2771 = vtanh.f32 %v1488_v9 }
 0x573   :  { %v2766_v45 = vpop.eup %2765 }
 0x574   :  { %v2768_v29 = vpop.eup %2767  ;;  %v1420_v31 = vsel %vm1418_vm4, %v2766_v45, %v1248_v27 }
 0x575   :  { %v1419_v19 = vsel %vm1418_vm4, %v2768_v29, %v1247_v59 }
 0x576   :  { %v2678_v55 = vpack.c.bf16 %v1420_v31, %v1419_v19 }
 0x577   :  { %v2770_v63 = vpop.eup %2769 }
 0x578   :  { %v2772_v32 = vpop.eup %2771  ;;  %2679 = vmatprep.subr.bf16.mxu1 %v2678_v55  ;;  %v1504_v30 = vsel %vm1502_vm6, %v2770_v63, %v1332_v26  ;;  %v372_v63 = vadd.f32 %v3099_v2, %v165_v58 }
 0x579   :  { %2681 = vmatpush3.bf16.msra.mxu1 %v2678_v55  ;;  %v1503_v39 = vsel %vm1502_vm6, %v2772_v32, %v1331_v7  ;;  %v378_v55 = vadd.f32 %v3107_v6, %v170_v44 }
 0x57a   :  { %v2682_v40 = vpack.c.bf16 %v1504_v30, %v1503_v39 }
 0x57c   :  { %2589 = vmatmul.mubr.msk.f32.vlgmr.msra.gmra.mrb[28].mxu1 %vm638_vm5, %v3138_v20  ;;  %2683 = vmatprep.subr.bf16.mxu1 %v2682_v40 }
 0x57d   :  { %2685 = vmatpush3.bf16.msra.mxu1 %v2682_v40  ;;  %2595 = vmatprep.mubr.msk.f32.mxu1 %vm638_vm5, %v3125_v17 }
 0x580   :  { %2596 = vmatmul.mubr.msk.f32.vlgmr.msra.gmra.mrb[30].mxu1 %vm638_vm5, %v3138_v20 }
 0x581   :  { %2602 = vmatprep.mubr.msk.f32.mxu1 %vm638_vm5, %v3125_v17 }
 0x64f   :  { %v2590_v14 = vpop.f32.mrb[28].mxu1 }
 0x650   :  { %v1581_v42 = vadd.f32 %v2590_v14, %v354_v49  ;;  %v1575_v43 = vpop.f32.mrb[29].mxu1 }
 0x651   :  { %v1576_v48 = vadd.f32 %v1575_v43, %v348_v0 }
 0x652   :  { %2773 = vtanh.f32 %v1581_v42 }
 0x653   :  { %2775 = vtanh.f32 %v1576_v48  ;;  %v2597_v25 = vpop.f32.mrb[30].mxu1 }
 0x654   :  { %v1665_v27 = vadd.f32 %v2597_v25, %v356_v52  ;;  %v1659_v59 = vpop.f32.mrb[31].mxu1 }
 0x655   :  { %v1660_v46 = vadd.f32 %v1659_v59, %v350_v41  ;;  %v2035_v59 = vld [vmem:[%s3462_s6 + $0x18] sm:$0xff] }
 0x656   :  { %2777 = vtanh.f32 %v1665_v27  ;;  %v2032_v27 = vld [vmem:[%s3462_s6] sm:$0xff] }
 0x657   :  { %2779 = vtanh.f32 %v1660_v46  ;;  %v2036_v46 = vld [vmem:[%s3462_s6 + $0x20] sm:$0xff] }
 0x65c   :  { %v2774_v47 = vpop.eup %2773 }
 0x65d   :  { %v2776_v33 = vpop.eup %2775  ;;  %v1592_v35 = vsel %vm1590_vm7, %v2774_v47, %v1420_v31  ;;  %v2037_v47 = vld [vmem:[%s3462_s6 + $0x28] sm:$0xff] }
 0x65e   :  { %v1591_v28 = vsel %vm1590_vm7, %v2776_v33, %v1419_v19  ;;  %v2038_v33 = vld [vmem:[%s3462_s6 + $0x30] sm:$0xff] }
 0x65f   :  { %v2686_v26 = vpack.c.bf16 %v1592_v35, %v1591_v28 }
 0x660   :  { %v2778_v7 = vpop.eup %2777 }
 0x661   :  { %v2780_v36 = vpop.eup %2779  ;;  %2687 = vmatprep.subr.bf16.mxu1 %v2686_v26  ;;  %v1676_v34 = vsel %vm1674_vm8, %v2778_v7, %v1504_v30 }
 0x662   :  { %2689 = vmatpush3.bf16.msra.mxu1 %v2686_v26  ;;  %v1675_v51 = vsel %vm1674_vm8, %v2780_v36, %v1503_v39 }
 0x663   :  { %v2690_v5 = vpack.c.bf16 %v1676_v34, %v1675_v51 }
 0x665   :  { %2603 = vmatmul.mubr.msk.f32.vlgmr.msra.gmra.mrb[32].mxu1 %vm638_vm5, %v3138_v20  ;;  %2691 = vmatprep.subr.bf16.mxu1 %v2690_v5 }
 0x666   :  { %2693 = vmatpush3.bf16.msra.mxu1 %v2690_v5  ;;  %2609 = vmatprep.mubr.msk.f32.mxu1 %vm638_vm5, %v3125_v17 }
 0x669   :  { %2610 = vmatmul.mubr.msk.f32.vlgmr.msra.gmra.mrb[34].mxu1 %vm638_vm5, %v3138_v20 }
 0x66a   :  { %2623 = vmatprep.mubr.msk.f32.mxu1 %vm638_vm5, %v3125_v17 }
 0x738   :  { %v2604_v13 = vpop.f32.mrb[32].mxu1 }
 0x739   :  { %v1753_v21 = vadd.f32 %v2604_v13, %v366_v57  ;;  %v1747_v23 = vpop.f32.mrb[33].mxu1 }
 0x73a   :  { %v1748_v11 = vadd.f32 %v1747_v23, %v360_v18 }
 0x73b   :  { %2781 = vtanh.f32 %v1753_v21 }
 0x73c   :  { %2783 = vtanh.f32 %v1748_v11  ;;  %v2611_v24 = vpop.f32.mrb[34].mxu1 }
 0x73d   :  { %v1837_v22 = vadd.f32 %v2611_v24, %v368_v50  ;;  %v1831_v15 = vpop.f32.mrb[35].mxu1 }
 0x73e   :  { %v1832_v17 = vadd.f32 %v1831_v15, %v362_v56 }
 0x73f   :  { %2785 = vtanh.f32 %v1837_v22 }
 0x740   :  { %2787 = vtanh.f32 %v1832_v17 }
 0x745   :  { %v2782_v54 = vpop.eup %2781 }
 0x746   :  { %v2784_v37 = vpop.eup %2783  ;;  %v1764_v3 = vsel %vm1762_vm9, %v2782_v54, %v1592_v35  ;;  %v2039_v35 = vld [vmem:[%s3462_s6 + $0x38] sm:$0xff] }
 0x747   :  { %v1763_v9 = vsel %vm1762_vm9, %v2784_v37, %v1591_v28  ;;  %v2051_v28 = vpop.permute.xlu0 %2050 }
 0x748   :  { %v2694_v45 = vpack.c.bf16 %v1764_v3, %v1763_v9 }
 0x749   :  { %v2786_v29 = vpop.eup %2785 }
 0x74a   :  { %v2788_v53 = vpop.eup %2787  ;;  %2695 = vmatprep.subr.bf16.mxu0 %v2694_v45  ;;  %v1848_v38 = vsel %vm1846_vm10, %v2786_v29, %v1676_v34 }
 0x74b   :  { %2697 = vmatpush3.bf16.msra.mxu0 %v2694_v45  ;;  %v1847_v31 = vsel %vm1846_vm10, %v2788_v53, %v1675_v51  ;;  %v2056_v51 = vpop.permute.xlu1 %2055 }
 0x74c   :  { %v2698_v19 = vpack.c.bf16 %v1848_v38, %v1847_v31 }
 0x74e   :  { %2617 = vmatmul.mubr.msk.f32.vlgmr.msra.gmra.mrb[28].mxu0 %vm638_vm5, %v3138_v20  ;;  %2699 = vmatprep.subr.bf16.mxu1 %v2698_v19 }
 0x74f   :  { %2701 = vmatpush3.bf16.msra.mxu1 %v2698_v19  ;;  %2176 = vmatprep.mubr.f32.mxu0 %v2861_v8  ;;  %v2066_v11 = vpop.permute.xlu1 %2065 }
 0x752   :  { %2624 = vmatmul.mubr.msk.f32.vlgmr.msra.gmra.mrb[36].mxu1 %vm638_vm5, %v3138_v20 }
 0x753   :  { %2316 = vmatprep.mubr.f32.mxu1 %v2861_v8  ;;  %v2076_v19 = vpop.permute.xlu1 %2075 }
 0x821   :  { %v2618_v32 = vpop.f32.mrb[28].mxu0 }
 0x822   :  { %v1925_v30 = vadd.f32 %v2618_v32, %v378_v55  ;;  %v1919_v39 = vpop.f32.mrb[29].mxu0 }
 0x823   :  { %v1920_v40 = vadd.f32 %v1919_v39, %v372_v63 }
 0x824   :  { %2789 = vtanh.f32 %v1925_v30 }
 0x825   :  { %2791 = vtanh.f32 %v1920_v40  ;;  %v2625_v49 = vpop.f32.mrb[36].mxu1 }
 0x826   :  { %v2009_v20 = vadd.f32 %v2625_v49, %v380_v60  ;;  %v2003_v0 = vpop.f32.mrb[37].mxu1 }
 0x827   :  { %v2004_v14 = vadd.f32 %v2003_v0, %v374_v61 }
 0x828   :  { %2793 = vtanh.f32 %v2009_v20 }
 0x829   :  { %2795 = vtanh.f32 %v2004_v14 }
 0x82e   :  { %v2790_v42 = vpop.eup %2789 }
 0x82f   :  { %v2792_v2 = vpop.eup %2791  ;;  %v1936_v6 = vsel %vm1934_vm11, %v2790_v42, %v1764_v3 }
 0x830   :  { %v1935_v43 = vsel %vm1934_vm11, %v2792_v2, %v1763_v9  ;;  %v2086_v2 = vpop.permute.xlu1 %2085 }
 0x831   :  { %v2704_v48 = vpack.c.bf16 %v1936_v6, %v1935_v43 }
 0x832   :  { %v2794_v52 = vpop.eup %2793 }
 0x833   :  { %v2796_v10 = vpop.eup %2795  ;;  %v2020_v41 = vsel %vm2018_vm12, %v2794_v52, %v1848_v38 }
 0x834   :  { %v2019_v4 = vsel %vm2018_vm12, %v2796_v10, %v1847_v31 }
 0x835   :  { %v2702_v25 = vpack.c.bf16 %v2020_v41, %v2019_v4 }
 0x837   :  { %2703 = vmatprep.subr.bf16.mxu0 %v2702_v25 }
 0x838   :  { %2705 = vmatpush1.bf16.msra.mxu0 %v2704_v48 }
 0x83b   :  { %2442 = vmatmul.mubr.msk.f32.vlgmr.msra.gmra.mrb[30].mxu0 %vm638_vm5, %v2032_v27 }
 0x83c   :  { %2182 = vmatprep.mubr.f32.mxu0 %v2861_v8 }
 0x83f   :  { %2443 = vmatmul.mubr.msk.f32.gmra.mrb[32].mxu0 %vm638_vm5, %v2033_v16 }
 0x840   :  { %2188 = vmatprep.mubr.f32.mxu0 %v2861_v8 }
 0x843   :  { %2444 = vmatmul.mubr.msk.f32.gmra.mrb[34].mxu0 %vm638_vm5, %v2034_v12 }
 0x844   :  { %2194 = vmatprep.mubr.f32.mxu0 %v2861_v8 }
 0x847   :  { %2445 = vmatmul.mubr.msk.f32.gmra.mrb[36].mxu0 %vm638_vm5, %v2035_v59 }
 0x848   :  { %2200 = vmatprep.mubr.f32.mxu0 %v2861_v8 }
 0x84b   :  { %2446 = vmatmul.mubr.msk.f32.gmra.mrb[38].mxu0 %vm638_vm5, %v2036_v46 }
 0x84c   :  { %2206 = vmatprep.mubr.f32.mxu0 %v2861_v8 }
 0x84f   :  { %2447 = vmatmul.mubr.msk.f32.gmra.mrb[40].mxu0 %vm638_vm5, %v2037_v47 }
 0x850   :  { %2212 = vmatprep.mubr.f32.mxu0 %v2861_v8 }
 0x853   :  { %2448 = vmatmul.mubr.msk.f32.gmra.mrb[42].mxu0 %vm638_vm5, %v2038_v33 }
 0x854   :  { %2218 = vmatprep.mubr.f32.mxu0 %v2861_v8  ;;  %v2061_v8 = vpop.permute.xlu0 %2060 }
 0x857   :  { %2449 = vmatmul.mubr.msk.f32.gmra.mrb[44].mxu0 %vm638_vm5, %v2039_v35  ;;  %vm2248_vm5 = vcmask 523264  }
 0x858   :  { %v2071_v54 = vpop.permute.xlu0 %2070 }
 0x85c   :  { %v2081_v39 = vpop.permute.xlu0 %2080 }
 0x90e   :  { %v2178_v26 = vpop.f32.mrb[30].mxu0 }
 0x90f   :  { %v2179_v7 = vadd.f32 %v2178_v26, %v2051_v28  ;;  %v2180_v36 = vpop.f32.mrb[31].mxu0  ;;  %v2246_v26 = vpop.permute.xlu0 %2245 }
 0x910   :  { %v2181_v34 = vadd.f32 %v2180_v36, %v2051_v28  ;;  %v2241_v28 = vld [vmem:[%s3464_s8] sm:$0x3]  ;;  %s2865_s8 = smov [#allocation6]  }
 0x911   :  { %2797 = vtanh.f32 %v2179_v7  ;;  %s2380_s2 = sshll.u32 %s2865_s8, 4  ;;  %s2381_s2 = int_to_ptr.vmem [resolvable:$true] %s2380_s2 }
 0x912   :  { %v2184_v5 = vpop.f32.mrb[32].mxu0  ;;  %2799 = vtanh.f32 %v2181_v34  ;;  %s2837_s5 = scalar_lea.vmem %s2381_s2, 64  ;;  %p2842_p1 = scmp.lt.s32.totalorder %s2381_s2, %s2381_s2 }
 0x913   :  { %v2185_v62 = vadd.f32 %v2184_v5, %v2056_v51  ;;  %v2186_v1 = vpop.f32.mrb[33].mxu0  ;;  %p2838_p0 = scmp.ne.s32.totalorder %s2381_s2, %s2837_s5  ;;  %p2843_p2 = scmp.lt.s32.totalorder %s2837_s5, %s2837_s5 }
 0x914   :  { %v2187_v57 = vadd.f32 %v2186_v1, %v2056_v51 }
 0x915   :  { %2801 = vtanh.f32 %v2185_v62  ;;  %p2844_p3 = por %p2843_p2, %p2842_p1 }
 0x916   :  { %2803 = vtanh.f32 %v2187_v57  ;;  %v2190_v18 = vpop.f32.mrb[34].mxu0 }
 0x917   :  { %v2191_v13 = vadd.f32 %v2190_v18, %v2061_v8  ;;  %v2192_v21 = vpop.f32.mrb[35].mxu0  ;;  %p2845_p4 = pnand %p2844_p3, %p2838_p0 }
 0x918   :  { %v2193_v23 = vadd.f32 %v2192_v21, %v2061_v8 }
 0x919   :  { %2805 = vtanh.f32 %v2191_v13 }
 0x91a   :  { %v2196_v50 = vpop.f32.mrb[36].mxu0  ;;  %2807 = vtanh.f32 %v2193_v23 }
 0x91b   :  { %v2197_v56 = vadd.f32 %v2196_v50, %v2066_v11  ;;  %v2198_v24 = vpop.f32.mrb[37].mxu0  ;;  %v2798_v15 = vpop.eup %2797 }
 0x91c   :  { %v2199_v22 = vadd.f32 %v2198_v24, %v2066_v11  ;;  %v2800_v17 = vpop.eup %2799 }
 0x91d   :  { %2809 = vtanh.f32 %v2197_v56 }
 0x91e   :  { %2811 = vtanh.f32 %v2199_v22  ;;  %v2202_v37 = vpop.f32.mrb[38].mxu0 }
 0x91f   :  { %v2802_v3 = vpop.eup %2801  ;;  %v2203_v9 = vadd.f32 %v2202_v37, %v2071_v54  ;;  %v2204_v45 = vpop.f32.mrb[39].mxu0 }
 0x920   :  { %v2804_v29 = vpop.eup %2803  ;;  %v2205_v53 = vadd.f32 %v2204_v45, %v2071_v54  ;;  %v2708_v38 = vpack.c.bf16 %v2802_v3, %v2798_v15 }
 0x921   :  { %v2706_v31 = vpack.c.bf16 %v2804_v29, %v2800_v17  ;;  %2813 = vtanh.f32 %v2203_v9 }
 0x922   :  { %v2208_v44 = vpop.f32.mrb[40].mxu0  ;;  %2815 = vtanh.f32 %v2205_v53 }
 0x923   :  { %v2209_v58 = vadd.f32 %v2208_v44, %v2076_v19  ;;  %v2210_v55 = vpop.f32.mrb[41].mxu0  ;;  %2707 = vmatprep.subr.bf16.mxu1 %v2706_v31  ;;  %v2806_v32 = vpop.eup %2805 }
 0x924   :  { %v2211_v63 = vadd.f32 %v2210_v55, %v2076_v19  ;;  %2709 = vmatpush1.bf16.msra.mxu1 %v2708_v38  ;;  %v2808_v30 = vpop.eup %2807 }
 0x925   :  { %2817 = vtanh.f32 %v2209_v58 }
 0x926   :  { %2819 = vtanh.f32 %v2211_v63  ;;  %v2214_v40 = vpop.f32.mrb[42].mxu0 }
 0x927   :  { %v2810_v60 = vpop.eup %2809  ;;  %v2215_v61 = vadd.f32 %v2214_v40, %v2081_v39  ;;  %v2216_v49 = vpop.f32.mrb[43].mxu0 }
 0x928   :  { %v2812_v20 = vpop.eup %2811  ;;  %v2217_v0 = vadd.f32 %v2216_v49, %v2081_v39  ;;  %v2712_v14 = vpack.c.bf16 %v2810_v60, %v2806_v32 }
 0x929   :  { %v2710_v42 = vpack.c.bf16 %v2812_v20, %v2808_v30  ;;  %2821 = vtanh.f32 %v2215_v61 }
 0x92a   :  { %v2220_v6 = vpop.f32.mrb[44].mxu0  ;;  %2823 = vtanh.f32 %v2217_v0 }
 0x92b   :  { %v2221_v43 = vadd.f32 %v2220_v6, %v2086_v2  ;;  %v2222_v48 = vpop.f32.mrb[45].mxu0  ;;  %2711 = vmatprep.subr.bf16.mxu1 %v2710_v42  ;;  %v2814_v10 = vpop.eup %2813 }
 0x92c   :  { %v2223_v52 = vadd.f32 %v2222_v48, %v2086_v2  ;;  %2713 = vmatpush1.bf16.msra.mxu1 %v2712_v14  ;;  %v2816_v41 = vpop.eup %2815 }
 0x92d   :  { %2825 = vtanh.f32 %v2221_v43 }
 0x92e   :  { %2827 = vtanh.f32 %v2223_v52 }
 0x92f   :  { %v2818_v4 = vpop.eup %2817 }
 0x930   :  { %v2820_v25 = vpop.eup %2819  ;;  %v2716_v27 = vpack.c.bf16 %v2818_v4, %v2814_v10 }
 0x931   :  { %v2714_v16 = vpack.c.bf16 %v2820_v25, %v2816_v41 }
 0x933   :  { %2715 = vmatprep.subr.bf16.mxu1 %v2714_v16  ;;  %v2822_v12 = vpop.eup %2821 }
 0x934   :  { %2717 = vmatpush1.bf16.msra.mxu1 %v2716_v27  ;;  %v2824_v59 = vpop.eup %2823 }
 0x937   :  { %v2826_v46 = vpop.eup %2825 }
 0x938   :  { %v2828_v47 = vpop.eup %2827  ;;  %v2720_v33 = vpack.c.bf16 %v2826_v46, %v2822_v12 }
 0x939   :  { %v2718_v35 = vpack.c.bf16 %v2828_v47, %v2824_v59 }
 0x93b   :  { %2719 = vmatprep.subr.bf16.mxu1 %v2718_v35 }
 0x93c   :  { %2721 = vmatpush1.bf16.msra.mxu1 %v2720_v33 }
 0x93f   :  { %2450 = vmatmul.mubr.msk.f32.vlgmr.msra.gmra.mrb[38].mxu1 %vm2248_vm5, %v2241_v28 }
 0xa12   :  { %v2318_v7 = vpop.f32.mrb[38].mxu1 }
 0xa13   :  { %v2319_v36 = vadd.f32 %v2318_v7, %v2246_v26  ;;  %v2320_v34 = vpop.f32.mrb[39].mxu1 }
 0xa14   :  { %v2321_v51 = vadd.f32 %v2320_v34, %v2246_v26 }
 0xa15   :  { %v2324_v5 = vsel %vm2323_vm13, %v2319_v36, -inf }
 0xa16   :  { %v2325_v62 = vrot.slane %v2324_v5, 4  ;;  %v2331_v1 = vsel %vm2323_vm13, %v2321_v51, -inf }
 0xa17   :  { %v2332_v57 = vrot.slane %v2331_v1, 4 }
 0xa18   :  { %v2326_v8 = vmax.f32 %v2324_v5, %v2325_v62 }
 0xa19   :  { %v2333_v18 = vmax.f32 %v2331_v1, %v2332_v57 }
 0xa1a   :  { %v2327_v13 = vrot.slane %v2326_v8, 2 }
 0xa1b   :  { %v2334_v21 = vrot.slane %v2333_v18, 2 }
 0xa1c   :  { %v2328_v23 = vmax.f32 %v2326_v8, %v2327_v13 }
 0xa1d   :  { %v2335_v11 = vmax.f32 %v2333_v18, %v2334_v21 }
 0xa1e   :  { %v2329_v50 = vrot.slane %v2328_v23, 1 }
 0xa1f   :  { %v2336_v56 = vrot.slane %v2335_v11, 1 }
 0xa20   :  { %v2330_v24 = vmax.f32 %v2328_v23, %v2329_v50 }
 0xa21   :  { %v2337_v22 = vmax.f32 %v2335_v11, %v2336_v56 }
 0xa22   :  { %v2338_v15 = vsub.f32 %v2319_v36, %v2330_v24 }
 0xa23   :  { %v2339_v17 = vsub.f32 %v2321_v51, %v2337_v22 }
 0xa24   :  { %v2340_v54 = vmul.f32 1.442695, %v2338_v15 }
 0xa25   :  { %v2342_v37 = vmul.f32 1.442695, %v2339_v17 }
 0xa26   :  { %2829 = vpow2.f32 %v2340_v54 }
 0xa27   :  { %2831 = vpow2.f32 %v2342_v37 }
 0xa30   :  { %v2830_v3 = vpop.eup %2829 }
 0xa31   :  { %v2832_v9 = vpop.eup %2831  ;;  %v2344_v45 = vsel %vm2323_vm13, %v2830_v3, 0.0 }
 0xa32   :  { %v2345_v29 = vrot.slane %v2344_v45, 4  ;;  %v2351_v53 = vsel %vm2323_vm13, %v2832_v9, 0.0 }
 0xa33   :  { %v2352_v38 = vrot.slane %v2351_v53, 4 }
 0xa34   :  { %v2346_v31 = vadd.f32 %v2345_v29, %v2344_v45 }
 0xa35   :  { %v2353_v19 = vadd.f32 %v2352_v38, %v2351_v53 }
 0xa36   :  { %v2347_v44 = vrot.slane %v2346_v31, 2 }
 0xa37   :  { %v2354_v58 = vrot.slane %v2353_v19, 2 }
 0xa38   :  { %v2348_v55 = vadd.f32 %v2347_v44, %v2346_v31 }
 0xa39   :  { %v2355_v63 = vadd.f32 %v2354_v58, %v2353_v19 }
 0xa3a   :  { %v2349_v32 = vrot.slane %v2348_v55, 1 }
 0xa3b   :  { %v2356_v30 = vrot.slane %v2355_v63, 1 }
 0xa3c   :  { %v2350_v39 = vadd.f32 %v2349_v32, %v2348_v55 }
 0xa3d   :  { %v2357_v40 = vadd.f32 %v2356_v30, %v2355_v63 }
 0xa3e   :  { %2833 = vrcp.f32 %v2350_v39 }
 0xa3f   :  { %2835 = vrcp.f32 %v2357_v40 }
 0xa48   :  { %v2834_v60 = vpop.eup %2833 }
 0xa49   :  { %v2836_v61 = vpop.eup %2835  ;;  %v2360_v49 = vmul.f32 %v2834_v60, %v2830_v3 }
 0xa4a   :  { %v2361_v20 = vmul.f32 %v2836_v61, %v2832_v9 }
 0xa4c   :  { %v2364_v0 = vcombine.low %v2360_v49, %v2361_v20 }
 0xa4e   :  { %2451 = vst.sshfl [vmem:[#allocation6] sm:$0x33 pattern:$0x76325410] %v2364_v0 }
 0xa4f   :  { %2848 = shalt.err (!%p2845_p4)
}
 0xa50   :  { %s2849_s20 = scalar_lea.hbm %s3466_s10, 64 }
 0xa51   :  { %p2850_p5 = scmp.ne.s32.totalorder %s3466_s10, %s2849_s20  ;;  %p2853_p6 = scmp.lt.u32.totalorder %s2849_s20, %s3466_s10 }
 0xa53   :  { %p2855_p7 = pnand %p2853_p6, %p2850_p5 }
 0xa55   :  { %2858 = shalt.err (!%p2855_p7)
}
 0xa56   :  { %2383 = dma.vmem_to_hbm [thread:$0]  %s2381_s2, 64, %s3466_s10, [#allocation7]  }
 0xa57   :  { %2859 = dma.done.wait [#allocation7], 64  }
 0xa58   :  { %2860 = vsyncadd [#allocation7], 4294967232 }
 0xa59   :  { %2387 = vsyncpa [#allocation7], 1 }

</bundles_post_ra>
